<compile_context>
chip_gen: v7x
topology: tpu7x:2x2x1
jax: 0.10.0
libtpu: 0.0.40
codegen_flags: <defaults>
</compile_context>

<pallas_src>
import jax
import jax.numpy as jnp
from jax.experimental import pallas as pl
from jax.experimental.pallas import tpu as pltpu

_MAX_TILE_ROWS = 8192     # (8192, 1) f32 block = 4 MiB VMEM; 8 MiB double-buffered.
_PALLAS_MIN_ROWS = 8192   # below ~one tile of rows, use the fused jnp.full path.


def _round_up(v, m):
    return ((v + m - 1) // m) * m


def _fill_kernel(s_ref, out_ref):
    # s_ref:   (1, 1) SMEM scalar holding the precomputed exp(10 * variance).
    # out_ref: (tile_rows, 1) VMEM output block.
    out_ref[...] = jnp.full(out_ref.shape, s_ref[0, 0], dtype=out_ref.dtype)


def _fill_constant_pallas(n, s):
    """Write an (n, 1) f32 array filled with s[0, 0] in a single pass (no relayout)."""
    if n <= _MAX_TILE_ROWS:
        # Block equals the full leading dim -> (8,128) rule satisfied regardless
        # of divisibility, single grid step.
        tile, num_blocks = n, 1
    else:
        tile = _MAX_TILE_ROWS
        num_blocks = pl.cdiv(n, tile)
        # v7x has 2 TensorCores: with multiple blocks, prefer an even block count
        # so the "parallel" grid axis splits evenly across cores.
        if num_blocks % 2 == 1:
            even_tile = max(8, _round_up(pl.cdiv(n, num_blocks + 1), 8))
            if pl.cdiv(n, even_tile) % 2 == 0:
                tile, num_blocks = even_tile, pl.cdiv(n, even_tile)

    return pl.pallas_call(
        _fill_kernel,
        out_shape=jax.ShapeDtypeStruct((n, 1), jnp.float32),
        grid=(num_blocks,),
        in_specs=[pl.BlockSpec(memory_space=pltpu.MemorySpace.SMEM)],
        out_specs=pl.BlockSpec((tile, 1), lambda i: (i, 0)),
        compiler_params=pltpu.CompilerParams(
            dimension_semantics=("parallel",)),
        cost_estimate=pl.CostEstimate(
            flops=0, transcendentals=0, bytes_accessed=4 * n),
    )(s)


def _forward_impl(x, variance):
    n = x.shape[0]
    # Hoisted scalar: exp(variance * 10), computed once (not per grid step).
    s = jnp.exp(jnp.asarray(variance, dtype=jnp.float32) * 10.0)
    if n == 0:
        return jnp.zeros((0, 1), dtype=jnp.float32)
    if n < _PALLAS_MIN_ROWS:
        # Launch-overhead-bound regime: a fused constant fill materializes
        # nothing extra and fuses into the consumer.
        return jnp.full((n, 1), s, dtype=jnp.float32)
    return _fill_constant_pallas(n, s.reshape(1, 1))


@jax.custom_vjp
def single_variance_forward(x, variance):
    """Pallas equivalent of SingleVarianceNetwork.forward -> (len(x), 1) f32."""
    return _forward_impl(x, variance)


def _svn_fwd(x, variance):
    return _forward_impl(x, variance), (x, variance)


def _svn_bwd(res, g):
    x, variance = res
    v = jnp.asarray(variance, dtype=jnp.float32)
    d_var = (10.0 * jnp.exp(v * 10.0)) * jnp.sum(g.astype(jnp.float32))
    d_var = d_var.astype(jnp.result_type(variance))
    return jnp.zeros_like(x), d_var


single_variance_forward.defvjp(_svn_fwd, _svn_bwd)


if __name__ == "__main__":
    key = jax.random.PRNGKey(0)

    # Deterministic parameter init, mirroring SingleVarianceNetwork(init_val=0.3).
    init_val = 0.3
    variance = jnp.float32(init_val)
    scale = jnp.exp(variance * 10.0)

    # 1) Small input (typical NeuS query) -> fused jnp.full fallback path.
    x_small = jax.random.normal(key, (8, 3), dtype=jnp.float32)
    out_small = jax.block_until_ready(single_variance_forward(x_small, variance))
    ref_small = jnp.ones((8, 1), dtype=jnp.float32) * scale
    assert out_small.shape == (8, 1) and out_small.dtype == jnp.float32
    assert jnp.allclose(out_small, ref_small, rtol=1e-6, atol=1e-6)

    # 2) Pallas-kernel path via the public wrapper: >= one tile of rows,
    #    non-multiple-of-8 N to exercise edge masking, 2 blocks for both v7x TCs.
    n_big = 8200
    x_big = jax.random.normal(key, (n_big, 3), dtype=jnp.float32)
    out_big = jax.block_until_ready(single_variance_forward(x_big, variance))
    assert out_big.shape == (n_big, 1) and out_big.dtype == jnp.float32
    assert jnp.allclose(out_big, jnp.full((n_big, 1), scale), rtol=1e-6, atol=1e-6)

    # 3) Direct Pallas-kernel checks at small sizes (single block; odd-N edge case).
    s11 = scale.reshape(1, 1)
    for n in (2048, 2093):
        out_n = jax.block_until_ready(_fill_constant_pallas(n, s11))
        assert out_n.shape == (n, 1)
        assert jnp.allclose(out_n, jnp.full((n, 1), scale), rtol=1e-6, atol=1e-6)

    # 4) Gradient w.r.t. the learnable variance parameter (custom_vjp).
    grad_fn = jax.grad(lambda v: jnp.sum(single_variance_forward(x_small, v)))
    g = jax.block_until_ready(grad_fn(variance))
    g_ref = 10.0 * jnp.exp(variance * 10.0) * x_small.shape[0]
    assert jnp.allclose(g, g_ref, rtol=1e-5, atol=1e-5)

    print("KERNEL_OK")
</pallas_src>

<mosaic_0001>
module attributes {stable_mosaic.version = 11 : i64} {
  func.func @_fill_kernel(%arg0: i32, %arg1: memref<1x1xf32, #tpu.memory_space<smem>>, %arg2: memref<8192x1xf32, #tpu.memory_space<vmem>>) attributes {dimension_semantics = [#tpu.dimension_semantics<parallel>], iteration_bounds = array<i64: 2>, scalar_prefetch = 0 : i64, scratch_operands = 0 : i64, tpu.core_type = #tpu.core_type<tc>, window_params = [{transform_indices = @transform_0, window_bounds = array<i64: 1, 1>}, {transform_indices = @transform_1, window_bounds = array<i64: 8192, 1>}]} {
    %c0 = arith.constant 0 : index
    %c0_0 = arith.constant 0 : index
    %0 = memref.load %arg1[%c0, %c0_0] : memref<1x1xf32, #tpu.memory_space<smem>>
    %1 = vector.broadcast %0 : f32 to vector<8192x1xf32>
    %c0_1 = arith.constant 0 : index
    %c0_2 = arith.constant 0 : index
    %2 = vector.load %arg2[%c0_1, %c0_2] : memref<8192x1xf32, #tpu.memory_space<vmem>>, vector<8192x1xf32>
    tpu.vector_store %arg2[%c0_1, %c0_2], %1 {strides = array<i32>} : memref<8192x1xf32, #tpu.memory_space<vmem>>, vector<8192x1xf32>,
    return
  }
  func.func @transform_0(%arg0: i32) -> (i32, i32) {
    %c0_i32 = arith.constant 0 : i32
    %c0_i32_0 = arith.constant 0 : i32
    %c0_i32_1 = arith.constant 0 : i32
    return %c0_i32, %c0_i32_0 : i32, i32
  }
  func.func @transform_1(%arg0: i32) -> (i32, i32) {
    %c0_i32 = arith.constant 0 : i32
    %c0_i32_0 = arith.constant 0 : i32
    return %arg0, %c0_i32 : i32, i32
  }
}

</mosaic_0001>

<bundles_post_ra>
// kernel: tpu_custom_call.1
= control target key start
LH: loop header
LB: loop body
LE: loop exit
PB: predicated region body
PF: predicated region fallthrough
CT: control target
= control target key end

     0   :  { %s5100_s0 = inlined_call_operand.<no memory space> [shape: f32[1,1], index: 0, kind: input, shape index: {}]   ;;  %s5101_s1 = inlined_call_operand.vmem [shape: f32[8200,1], index: 1, kind: output, shape index: {}]  }
   0x1   :  { %6 = sst [smem:[#allocation2]] %s5100_s0 }
   0x2   :  { %s1792_s8 = smov 0   ;;  %s1794_s9 = smov 0  }
   0x3   :  { %s1796_s10 = smov 0  }
   0x4 LB: > { %s1803_s11 = sadd.s32 4294967295, %s1745_s10   ;;  %s1805_s0 = sadd.s32 1, %s1745_s10   ;;  %s1745_s10 = sphi %s1796_s10, %s5110_s10   ;;  %s1741_s9 = sphi %s1794_s9, %s5109_s9   ;;  %s1737_s8 = sphi %s1792_s8, %s5108_s8  }
   0x5   : > { %s37_s12 = ssub.s32 %s1745_s10, %s1805_s0  ;;  %s40_s13 = sadd.s32 1, %s1741_s9 }
   0x6   : > { %p38_p0 = scmp.eq.s32.totalorder %s37_s12, 0  ;;  %p50_p1 = scmp.ne.s32.totalorder %s1741_s9, %s1737_s8 }
   0x7   : > { %p51_p2 = scmp.eq.s32.totalorder %s1803_s11, 1  ;;  %p1581_p3 = scmp.ge.s32.totalorder %s1745_s10, 1 }
   0x8   : > { %s1812_s14 = scalar_select %p38_p0, %s1741_s9, %s40_s13  }
   0x9   : > { %p1814_p4 = por %p51_p2, %p50_p1  ;;  %p78_p5 = scmp.lt.s32.totalorder %s1745_s10, 3 }
   0xb   : > { %p79_p6 = pnand %p1581_p3, %p78_p5 }
   0xc   : > { %s89_s16 = sand.u32 (!%p79_p6), 1, %s1737_s8   ;;  %s97_s17 = sld [smem:[#allocation2]] (!%p79_p6)  ;;  %vm99_vm0 = vcmask (!%p79_p6), 7168  }
   0xd   : > { %82 = sbr.rel (%p79_p6) target bundleno = 603 (0x25b), region = 24  ;;  %s1582_s18 = sshll.u32 (!%p79_p6), %s89_s16, 13 }
   0xe   : > { %s1820_s19 = scalar_lea.vmem (!%p79_p6), [#allocation3], %s1582_s18  }
  0x12   : > { %v1818_v0 = vstv (!%p79_p6), %s97_s17 }
  0x13   : > { %100 = vst.msk [vmem:[%s1820_s19] sm:$0xff] (!%p79_p6), %vm99_vm0, %v1818_v0  ;;  %101 = vst.msk [vmem:[%s1820_s19 + $0x8] sm:$0xff] (!%p79_p6), %vm99_vm0, %v1818_v0 }
  0x14   : > { %102 = vst.msk [vmem:[%s1820_s19 + $0x10] sm:$0xff] %vm99_vm0, %v1818_v0  ;;  %103 = vst.msk [vmem:[%s1820_s19 + $0x18] sm:$0xff] %vm99_vm0, %v1818_v0  ;;  %s1584_s20 = sshll.u32 (%p1814_p4), %s1803_s11, 10  ;;  %s1600_s21 = sshll.u32 (%p1814_p4), %s1803_s11, 13 }
  0x15   : > { %104 = vst.msk [vmem:[%s1820_s19 + $0x20] sm:$0xff] %vm99_vm0, %v1818_v0  ;;  %105 = vst.msk [vmem:[%s1820_s19 + $0x28] sm:$0xff] %vm99_vm0, %v1818_v0  ;;  %s1132_s22 = ssub.s32 (%p1814_p4), 1025, %s1584_s20  ;;  %s4901_s25 = scalar_lea.vmem (%p1814_p4), %s5101_s1, %s1600_s21  }
  0x16   : > { %106 = vst.msk [vmem:[%s1820_s19 + $0x30] sm:$0xff] %vm99_vm0, %v1818_v0  ;;  %107 = vst.msk [vmem:[%s1820_s19 + $0x38] sm:$0xff] %vm99_vm0, %v1818_v0  ;;  %p1133_p7 = scmp.lt.s32.totalorder (%p1814_p4), %s1132_s22, 1024 }
  0x17   : > { %108 = vst.msk [vmem:[%s1820_s19 + $0x40] sm:$0xff] %vm99_vm0, %v1818_v0  ;;  %109 = vst.msk [vmem:[%s1820_s19 + $0x48] sm:$0xff] %vm99_vm0, %v1818_v0 }
  0x18   : > { %110 = vst.msk [vmem:[%s1820_s19 + $0x50] sm:$0xff] %vm99_vm0, %v1818_v0  ;;  %111 = vst.msk [vmem:[%s1820_s19 + $0x58] sm:$0xff] %vm99_vm0, %v1818_v0 }
  0x19   : > { %112 = vst.msk [vmem:[%s1820_s19 + $0x60] sm:$0xff] %vm99_vm0, %v1818_v0  ;;  %113 = vst.msk [vmem:[%s1820_s19 + $0x68] sm:$0xff] %vm99_vm0, %v1818_v0 }
  0x1a   : > { %114 = vst.msk [vmem:[%s1820_s19 + $0x70] sm:$0xff] %vm99_vm0, %v1818_v0  ;;  %115 = vst.msk [vmem:[%s1820_s19 + $0x78] sm:$0xff] %vm99_vm0, %v1818_v0 }
  0x1b   : > { %116 = vst.msk [vmem:[%s1820_s19 + $0x80] sm:$0xff] %vm99_vm0, %v1818_v0  ;;  %117 = vst.msk [vmem:[%s1820_s19 + $0x88] sm:$0xff] %vm99_vm0, %v1818_v0 }
  0x1c   : > { %118 = vst.msk [vmem:[%s1820_s19 + $0x90] sm:$0xff] %vm99_vm0, %v1818_v0  ;;  %119 = vst.msk [vmem:[%s1820_s19 + $0x98] sm:$0xff] %vm99_vm0, %v1818_v0 }
  0x1d   : > { %120 = vst.msk [vmem:[%s1820_s19 + $0xa0] sm:$0xff] %vm99_vm0, %v1818_v0  ;;  %121 = vst.msk [vmem:[%s1820_s19 + $0xa8] sm:$0xff] %vm99_vm0, %v1818_v0 }
  0x1e   : > { %122 = vst.msk [vmem:[%s1820_s19 + $0xb0] sm:$0xff] %vm99_vm0, %v1818_v0  ;;  %123 = vst.msk [vmem:[%s1820_s19 + $0xb8] sm:$0xff] %vm99_vm0, %v1818_v0 }
  0x1f   : > { %124 = vst.msk [vmem:[%s1820_s19 + $0xc0] sm:$0xff] %vm99_vm0, %v1818_v0  ;;  %125 = vst.msk [vmem:[%s1820_s19 + $0xc8] sm:$0xff] %vm99_vm0, %v1818_v0 }
  0x20   : > { %126 = vst.msk [vmem:[%s1820_s19 + $0xd0] sm:$0xff] %vm99_vm0, %v1818_v0  ;;  %127 = vst.msk [vmem:[%s1820_s19 + $0xd8] sm:$0xff] %vm99_vm0, %v1818_v0 }
  0x21   : > { %128 = vst.msk [vmem:[%s1820_s19 + $0xe0] sm:$0xff] %vm99_vm0, %v1818_v0  ;;  %129 = vst.msk [vmem:[%s1820_s19 + $0xe8] sm:$0xff] %vm99_vm0, %v1818_v0 }
  0x22   : > { %130 = vst.msk [vmem:[%s1820_s19 + $0xf0] sm:$0xff] %vm99_vm0, %v1818_v0  ;;  %131 = vst.msk [vmem:[%s1820_s19 + $0xf8] sm:$0xff] %vm99_vm0, %v1818_v0 }
  0x23   : > { %132 = vst.msk [vmem:[%s1820_s19 + $0x100] sm:$0xff] %vm99_vm0, %v1818_v0  ;;  %133 = vst.msk [vmem:[%s1820_s19 + $0x108] sm:$0xff] %vm99_vm0, %v1818_v0 }
  0x24   : > { %134 = vst.msk [vmem:[%s1820_s19 + $0x110] sm:$0xff] %vm99_vm0, %v1818_v0  ;;  %135 = vst.msk [vmem:[%s1820_s19 + $0x118] sm:$0xff] %vm99_vm0, %v1818_v0 }
  0x25   : > { %136 = vst.msk [vmem:[%s1820_s19 + $0x120] sm:$0xff] %vm99_vm0, %v1818_v0  ;;  %137 = vst.msk [vmem:[%s1820_s19 + $0x128] sm:$0xff] %vm99_vm0, %v1818_v0 }
  0x26   : > { %138 = vst.msk [vmem:[%s1820_s19 + $0x130] sm:$0xff] %vm99_vm0, %v1818_v0  ;;  %139 = vst.msk [vmem:[%s1820_s19 + $0x138] sm:$0xff] %vm99_vm0, %v1818_v0 }
  0x27   : > { %140 = vst.msk [vmem:[%s1820_s19 + $0x140] sm:$0xff] %vm99_vm0, %v1818_v0  ;;  %141 = vst.msk [vmem:[%s1820_s19 + $0x148] sm:$0xff] %vm99_vm0, %v1818_v0 }
  0x28   : > { %142 = vst.msk [vmem:[%s1820_s19 + $0x150] sm:$0xff] %vm99_vm0, %v1818_v0  ;;  %143 = vst.msk [vmem:[%s1820_s19 + $0x158] sm:$0xff] %vm99_vm0, %v1818_v0 }
  0x29   : > { %144 = vst.msk [vmem:[%s1820_s19 + $0x160] sm:$0xff] %vm99_vm0, %v1818_v0  ;;  %145 = vst.msk [vmem:[%s1820_s19 + $0x168] sm:$0xff] %vm99_vm0, %v1818_v0 }
  0x2a   : > { %146 = vst.msk [vmem:[%s1820_s19 + $0x170] sm:$0xff] %vm99_vm0, %v1818_v0  ;;  %147 = vst.msk [vmem:[%s1820_s19 + $0x178] sm:$0xff] %vm99_vm0, %v1818_v0 }
  0x2b   : > { %148 = vst.msk [vmem:[%s1820_s19 + $0x180] sm:$0xff] %vm99_vm0, %v1818_v0  ;;  %149 = vst.msk [vmem:[%s1820_s19 + $0x188] sm:$0xff] %vm99_vm0, %v1818_v0 }
  0x2c   : > { %150 = vst.msk [vmem:[%s1820_s19 + $0x190] sm:$0xff] %vm99_vm0, %v1818_v0  ;;  %151 = vst.msk [vmem:[%s1820_s19 + $0x198] sm:$0xff] %vm99_vm0, %v1818_v0 }
  0x2d   : > { %152 = vst.msk [vmem:[%s1820_s19 + $0x1a0] sm:$0xff] %vm99_vm0, %v1818_v0  ;;  %153 = vst.msk [vmem:[%s1820_s19 + $0x1a8] sm:$0xff] %vm99_vm0, %v1818_v0 }
  0x2e   : > { %154 = vst.msk [vmem:[%s1820_s19 + $0x1b0] sm:$0xff] %vm99_vm0, %v1818_v0  ;;  %155 = vst.msk [vmem:[%s1820_s19 + $0x1b8] sm:$0xff] %vm99_vm0, %v1818_v0 }
  0x2f   : > { %156 = vst.msk [vmem:[%s1820_s19 + $0x1c0] sm:$0xff] %vm99_vm0, %v1818_v0  ;;  %157 = vst.msk [vmem:[%s1820_s19 + $0x1c8] sm:$0xff] %vm99_vm0, %v1818_v0 }
  0x30   : > { %158 = vst.msk [vmem:[%s1820_s19 + $0x1d0] sm:$0xff] %vm99_vm0, %v1818_v0  ;;  %159 = vst.msk [vmem:[%s1820_s19 + $0x1d8] sm:$0xff] %vm99_vm0, %v1818_v0 }
  0x31   : > { %160 = vst.msk [vmem:[%s1820_s19 + $0x1e0] sm:$0xff] %vm99_vm0, %v1818_v0  ;;  %161 = vst.msk [vmem:[%s1820_s19 + $0x1e8] sm:$0xff] %vm99_vm0, %v1818_v0 }
  0x32   : > { %162 = vst.msk [vmem:[%s1820_s19 + $0x1f0] sm:$0xff] %vm99_vm0, %v1818_v0  ;;  %163 = vst.msk [vmem:[%s1820_s19 + $0x1f8] sm:$0xff] %vm99_vm0, %v1818_v0 }
  0x33   : > { %164 = vst.msk [vmem:[%s1820_s19 + $0x200] sm:$0xff] %vm99_vm0, %v1818_v0  ;;  %165 = vst.msk [vmem:[%s1820_s19 + $0x208] sm:$0xff] %vm99_vm0, %v1818_v0 }
  0x34   : > { %166 = vst.msk [vmem:[%s1820_s19 + $0x210] sm:$0xff] %vm99_vm0, %v1818_v0  ;;  %167 = vst.msk [vmem:[%s1820_s19 + $0x218] sm:$0xff] %vm99_vm0, %v1818_v0 }
  0x35   : > { %168 = vst.msk [vmem:[%s1820_s19 + $0x220] sm:$0xff] %vm99_vm0, %v1818_v0  ;;  %169 = vst.msk [vmem:[%s1820_s19 + $0x228] sm:$0xff] %vm99_vm0, %v1818_v0 }
  0x36   : > { %170 = vst.msk [vmem:[%s1820_s19 + $0x230] sm:$0xff] %vm99_vm0, %v1818_v0  ;;  %171 = vst.msk [vmem:[%s1820_s19 + $0x238] sm:$0xff] %vm99_vm0, %v1818_v0 }
  0x37   : > { %172 = vst.msk [vmem:[%s1820_s19 + $0x240] sm:$0xff] %vm99_vm0, %v1818_v0  ;;  %173 = vst.msk [vmem:[%s1820_s19 + $0x248] sm:$0xff] %vm99_vm0, %v1818_v0 }
  0x38   : > { %174 = vst.msk [vmem:[%s1820_s19 + $0x250] sm:$0xff] %vm99_vm0, %v1818_v0  ;;  %175 = vst.msk [vmem:[%s1820_s19 + $0x258] sm:$0xff] %vm99_vm0, %v1818_v0 }
  0x39   : > { %176 = vst.msk [vmem:[%s1820_s19 + $0x260] sm:$0xff] %vm99_vm0, %v1818_v0  ;;  %177 = vst.msk [vmem:[%s1820_s19 + $0x268] sm:$0xff] %vm99_vm0, %v1818_v0 }
  0x3a   : > { %178 = vst.msk [vmem:[%s1820_s19 + $0x270] sm:$0xff] %vm99_vm0, %v1818_v0  ;;  %179 = vst.msk [vmem:[%s1820_s19 + $0x278] sm:$0xff] %vm99_vm0, %v1818_v0 }
  0x3b   : > { %180 = vst.msk [vmem:[%s1820_s19 + $0x280] sm:$0xff] %vm99_vm0, %v1818_v0  ;;  %181 = vst.msk [vmem:[%s1820_s19 + $0x288] sm:$0xff] %vm99_vm0, %v1818_v0 }
  0x3c   : > { %182 = vst.msk [vmem:[%s1820_s19 + $0x290] sm:$0xff] %vm99_vm0, %v1818_v0  ;;  %183 = vst.msk [vmem:[%s1820_s19 + $0x298] sm:$0xff] %vm99_vm0, %v1818_v0 }
  0x3d   : > { %184 = vst.msk [vmem:[%s1820_s19 + $0x2a0] sm:$0xff] %vm99_vm0, %v1818_v0  ;;  %185 = vst.msk [vmem:[%s1820_s19 + $0x2a8] sm:$0xff] %vm99_vm0, %v1818_v0 }
  0x3e   : > { %186 = vst.msk [vmem:[%s1820_s19 + $0x2b0] sm:$0xff] %vm99_vm0, %v1818_v0  ;;  %187 = vst.msk [vmem:[%s1820_s19 + $0x2b8] sm:$0xff] %vm99_vm0, %v1818_v0 }
  0x3f   : > { %188 = vst.msk [vmem:[%s1820_s19 + $0x2c0] sm:$0xff] %vm99_vm0, %v1818_v0  ;;  %189 = vst.msk [vmem:[%s1820_s19 + $0x2c8] sm:$0xff] %vm99_vm0, %v1818_v0 }
  0x40   : > { %190 = vst.msk [vmem:[%s1820_s19 + $0x2d0] sm:$0xff] %vm99_vm0, %v1818_v0  ;;  %191 = vst.msk [vmem:[%s1820_s19 + $0x2d8] sm:$0xff] %vm99_vm0, %v1818_v0 }
  0x41   : > { %192 = vst.msk [vmem:[%s1820_s19 + $0x2e0] sm:$0xff] %vm99_vm0, %v1818_v0  ;;  %193 = vst.msk [vmem:[%s1820_s19 + $0x2e8] sm:$0xff] %vm99_vm0, %v1818_v0 }
  0x42   : > { %194 = vst.msk [vmem:[%s1820_s19 + $0x2f0] sm:$0xff] %vm99_vm0, %v1818_v0  ;;  %195 = vst.msk [vmem:[%s1820_s19 + $0x2f8] sm:$0xff] %vm99_vm0, %v1818_v0 }
  0x43   : > { %196 = vst.msk [vmem:[%s1820_s19 + $0x300] sm:$0xff] %vm99_vm0, %v1818_v0  ;;  %197 = vst.msk [vmem:[%s1820_s19 + $0x308] sm:$0xff] %vm99_vm0, %v1818_v0 }
  0x44   : > { %198 = vst.msk [vmem:[%s1820_s19 + $0x310] sm:$0xff] %vm99_vm0, %v1818_v0  ;;  %199 = vst.msk [vmem:[%s1820_s19 + $0x318] sm:$0xff] %vm99_vm0, %v1818_v0 }
  0x45   : > { %200 = vst.msk [vmem:[%s1820_s19 + $0x320] sm:$0xff] %vm99_vm0, %v1818_v0  ;;  %201 = vst.msk [vmem:[%s1820_s19 + $0x328] sm:$0xff] %vm99_vm0, %v1818_v0 }
  0x46   : > { %202 = vst.msk [vmem:[%s1820_s19 + $0x330] sm:$0xff] %vm99_vm0, %v1818_v0  ;;  %203 = vst.msk [vmem:[%s1820_s19 + $0x338] sm:$0xff] %vm99_vm0, %v1818_v0 }
  0x47   : > { %204 = vst.msk [vmem:[%s1820_s19 + $0x340] sm:$0xff] %vm99_vm0, %v1818_v0  ;;  %205 = vst.msk [vmem:[%s1820_s19 + $0x348] sm:$0xff] %vm99_vm0, %v1818_v0 }
  0x48   : > { %206 = vst.msk [vmem:[%s1820_s19 + $0x350] sm:$0xff] %vm99_vm0, %v1818_v0  ;;  %207 = vst.msk [vmem:[%s1820_s19 + $0x358] sm:$0xff] %vm99_vm0, %v1818_v0 }
  0x49   : > { %208 = vst.msk [vmem:[%s1820_s19 + $0x360] sm:$0xff] %vm99_vm0, %v1818_v0  ;;  %209 = vst.msk [vmem:[%s1820_s19 + $0x368] sm:$0xff] %vm99_vm0, %v1818_v0 }
  0x4a   : > { %210 = vst.msk [vmem:[%s1820_s19 + $0x370] sm:$0xff] %vm99_vm0, %v1818_v0  ;;  %211 = vst.msk [vmem:[%s1820_s19 + $0x378] sm:$0xff] %vm99_vm0, %v1818_v0 }
  0x4b   : > { %212 = vst.msk [vmem:[%s1820_s19 + $0x380] sm:$0xff] %vm99_vm0, %v1818_v0  ;;  %213 = vst.msk [vmem:[%s1820_s19 + $0x388] sm:$0xff] %vm99_vm0, %v1818_v0 }
  0x4c   : > { %214 = vst.msk [vmem:[%s1820_s19 + $0x390] sm:$0xff] %vm99_vm0, %v1818_v0  ;;  %215 = vst.msk [vmem:[%s1820_s19 + $0x398] sm:$0xff] %vm99_vm0, %v1818_v0 }
  0x4d   : > { %216 = vst.msk [vmem:[%s1820_s19 + $0x3a0] sm:$0xff] %vm99_vm0, %v1818_v0  ;;  %217 = vst.msk [vmem:[%s1820_s19 + $0x3a8] sm:$0xff] %vm99_vm0, %v1818_v0 }
  0x4e   : > { %218 = vst.msk [vmem:[%s1820_s19 + $0x3b0] sm:$0xff] %vm99_vm0, %v1818_v0  ;;  %219 = vst.msk [vmem:[%s1820_s19 + $0x3b8] sm:$0xff] %vm99_vm0, %v1818_v0 }
  0x4f   : > { %220 = vst.msk [vmem:[%s1820_s19 + $0x3c0] sm:$0xff] %vm99_vm0, %v1818_v0  ;;  %221 = vst.msk [vmem:[%s1820_s19 + $0x3c8] sm:$0xff] %vm99_vm0, %v1818_v0 }
  0x50   : > { %222 = vst.msk [vmem:[%s1820_s19 + $0x3d0] sm:$0xff] %vm99_vm0, %v1818_v0  ;;  %223 = vst.msk [vmem:[%s1820_s19 + $0x3d8] sm:$0xff] %vm99_vm0, %v1818_v0 }
  0x51   : > { %224 = vst.msk [vmem:[%s1820_s19 + $0x3e0] sm:$0xff] %vm99_vm0, %v1818_v0  ;;  %225 = vst.msk [vmem:[%s1820_s19 + $0x3e8] sm:$0xff] %vm99_vm0, %v1818_v0 }
  0x52   : > { %226 = vst.msk [vmem:[%s1820_s19 + $0x3f0] sm:$0xff] %vm99_vm0, %v1818_v0  ;;  %227 = vst.msk [vmem:[%s1820_s19 + $0x3f8] sm:$0xff] %vm99_vm0, %v1818_v0 }
  0x53   : > { %228 = vst.msk [vmem:[%s1820_s19 + $0x400] sm:$0xff] %vm99_vm0, %v1818_v0  ;;  %229 = vst.msk [vmem:[%s1820_s19 + $0x408] sm:$0xff] %vm99_vm0, %v1818_v0 }
  0x54   : > { %230 = vst.msk [vmem:[%s1820_s19 + $0x410] sm:$0xff] %vm99_vm0, %v1818_v0  ;;  %231 = vst.msk [vmem:[%s1820_s19 + $0x418] sm:$0xff] %vm99_vm0, %v1818_v0 }
  0x55   : > { %232 = vst.msk [vmem:[%s1820_s19 + $0x420] sm:$0xff] %vm99_vm0, %v1818_v0  ;;  %233 = vst.msk [vmem:[%s1820_s19 + $0x428] sm:$0xff] %vm99_vm0, %v1818_v0 }
  0x56   : > { %234 = vst.msk [vmem:[%s1820_s19 + $0x430] sm:$0xff] %vm99_vm0, %v1818_v0  ;;  %235 = vst.msk [vmem:[%s1820_s19 + $0x438] sm:$0xff] %vm99_vm0, %v1818_v0 }
  0x57   : > { %236 = vst.msk [vmem:[%s1820_s19 + $0x440] sm:$0xff] %vm99_vm0, %v1818_v0  ;;  %237 = vst.msk [vmem:[%s1820_s19 + $0x448] sm:$0xff] %vm99_vm0, %v1818_v0 }
  0x58   : > { %238 = vst.msk [vmem:[%s1820_s19 + $0x450] sm:$0xff] %vm99_vm0, %v1818_v0  ;;  %239 = vst.msk [vmem:[%s1820_s19 + $0x458] sm:$0xff] %vm99_vm0, %v1818_v0 }
  0x59   : > { %240 = vst.msk [vmem:[%s1820_s19 + $0x460] sm:$0xff] %vm99_vm0, %v1818_v0  ;;  %241 = vst.msk [vmem:[%s1820_s19 + $0x468] sm:$0xff] %vm99_vm0, %v1818_v0 }
  0x5a   : > { %242 = vst.msk [vmem:[%s1820_s19 + $0x470] sm:$0xff] %vm99_vm0, %v1818_v0  ;;  %243 = vst.msk [vmem:[%s1820_s19 + $0x478] sm:$0xff] %vm99_vm0, %v1818_v0 }
  0x5b   : > { %244 = vst.msk [vmem:[%s1820_s19 + $0x480] sm:$0xff] %vm99_vm0, %v1818_v0  ;;  %245 = vst.msk [vmem:[%s1820_s19 + $0x488] sm:$0xff] %vm99_vm0, %v1818_v0 }
  0x5c   : > { %246 = vst.msk [vmem:[%s1820_s19 + $0x490] sm:$0xff] %vm99_vm0, %v1818_v0  ;;  %247 = vst.msk [vmem:[%s1820_s19 + $0x498] sm:$0xff] %vm99_vm0, %v1818_v0 }
  0x5d   : > { %248 = vst.msk [vmem:[%s1820_s19 + $0x4a0] sm:$0xff] %vm99_vm0, %v1818_v0  ;;  %249 = vst.msk [vmem:[%s1820_s19 + $0x4a8] sm:$0xff] %vm99_vm0, %v1818_v0 }
  0x5e   : > { %250 = vst.msk [vmem:[%s1820_s19 + $0x4b0] sm:$0xff] %vm99_vm0, %v1818_v0  ;;  %251 = vst.msk [vmem:[%s1820_s19 + $0x4b8] sm:$0xff] %vm99_vm0, %v1818_v0 }
  0x5f   : > { %252 = vst.msk [vmem:[%s1820_s19 + $0x4c0] sm:$0xff] %vm99_vm0, %v1818_v0  ;;  %253 = vst.msk [vmem:[%s1820_s19 + $0x4c8] sm:$0xff] %vm99_vm0, %v1818_v0 }
  0x60   : > { %254 = vst.msk [vmem:[%s1820_s19 + $0x4d0] sm:$0xff] %vm99_vm0, %v1818_v0  ;;  %255 = vst.msk [vmem:[%s1820_s19 + $0x4d8] sm:$0xff] %vm99_vm0, %v1818_v0 }
  0x61   : > { %256 = vst.msk [vmem:[%s1820_s19 + $0x4e0] sm:$0xff] %vm99_vm0, %v1818_v0  ;;  %257 = vst.msk [vmem:[%s1820_s19 + $0x4e8] sm:$0xff] %vm99_vm0, %v1818_v0 }
  0x62   : > { %258 = vst.msk [vmem:[%s1820_s19 + $0x4f0] sm:$0xff] %vm99_vm0, %v1818_v0  ;;  %259 = vst.msk [vmem:[%s1820_s19 + $0x4f8] sm:$0xff] %vm99_vm0, %v1818_v0 }
  0x63   : > { %260 = vst.msk [vmem:[%s1820_s19 + $0x500] sm:$0xff] %vm99_vm0, %v1818_v0  ;;  %261 = vst.msk [vmem:[%s1820_s19 + $0x508] sm:$0xff] %vm99_vm0, %v1818_v0 }
  0x64   : > { %262 = vst.msk [vmem:[%s1820_s19 + $0x510] sm:$0xff] %vm99_vm0, %v1818_v0  ;;  %263 = vst.msk [vmem:[%s1820_s19 + $0x518] sm:$0xff] %vm99_vm0, %v1818_v0 }
  0x65   : > { %264 = vst.msk [vmem:[%s1820_s19 + $0x520] sm:$0xff] %vm99_vm0, %v1818_v0  ;;  %265 = vst.msk [vmem:[%s1820_s19 + $0x528] sm:$0xff] %vm99_vm0, %v1818_v0 }
  0x66   : > { %266 = vst.msk [vmem:[%s1820_s19 + $0x530] sm:$0xff] %vm99_vm0, %v1818_v0  ;;  %267 = vst.msk [vmem:[%s1820_s19 + $0x538] sm:$0xff] %vm99_vm0, %v1818_v0 }
  0x67   : > { %268 = vst.msk [vmem:[%s1820_s19 + $0x540] sm:$0xff] %vm99_vm0, %v1818_v0  ;;  %269 = vst.msk [vmem:[%s1820_s19 + $0x548] sm:$0xff] %vm99_vm0, %v1818_v0 }
  0x68   : > { %270 = vst.msk [vmem:[%s1820_s19 + $0x550] sm:$0xff] %vm99_vm0, %v1818_v0  ;;  %271 = vst.msk [vmem:[%s1820_s19 + $0x558] sm:$0xff] %vm99_vm0, %v1818_v0 }
  0x69   : > { %272 = vst.msk [vmem:[%s1820_s19 + $0x560] sm:$0xff] %vm99_vm0, %v1818_v0  ;;  %273 = vst.msk [vmem:[%s1820_s19 + $0x568] sm:$0xff] %vm99_vm0, %v1818_v0 }
  0x6a   : > { %274 = vst.msk [vmem:[%s1820_s19 + $0x570] sm:$0xff] %vm99_vm0, %v1818_v0  ;;  %275 = vst.msk [vmem:[%s1820_s19 + $0x578] sm:$0xff] %vm99_vm0, %v1818_v0 }
  0x6b   : > { %276 = vst.msk [vmem:[%s1820_s19 + $0x580] sm:$0xff] %vm99_vm0, %v1818_v0  ;;  %277 = vst.msk [vmem:[%s1820_s19 + $0x588] sm:$0xff] %vm99_vm0, %v1818_v0 }
  0x6c   : > { %278 = vst.msk [vmem:[%s1820_s19 + $0x590] sm:$0xff] %vm99_vm0, %v1818_v0  ;;  %279 = vst.msk [vmem:[%s1820_s19 + $0x598] sm:$0xff] %vm99_vm0, %v1818_v0 }
  0x6d   : > { %280 = vst.msk [vmem:[%s1820_s19 + $0x5a0] sm:$0xff] %vm99_vm0, %v1818_v0  ;;  %281 = vst.msk [vmem:[%s1820_s19 + $0x5a8] sm:$0xff] %vm99_vm0, %v1818_v0 }
  0x6e   : > { %282 = vst.msk [vmem:[%s1820_s19 + $0x5b0] sm:$0xff] %vm99_vm0, %v1818_v0  ;;  %283 = vst.msk [vmem:[%s1820_s19 + $0x5b8] sm:$0xff] %vm99_vm0, %v1818_v0 }
  0x6f   : > { %284 = vst.msk [vmem:[%s1820_s19 + $0x5c0] sm:$0xff] %vm99_vm0, %v1818_v0  ;;  %285 = vst.msk [vmem:[%s1820_s19 + $0x5c8] sm:$0xff] %vm99_vm0, %v1818_v0 }
  0x70   : > { %286 = vst.msk [vmem:[%s1820_s19 + $0x5d0] sm:$0xff] %vm99_vm0, %v1818_v0  ;;  %287 = vst.msk [vmem:[%s1820_s19 + $0x5d8] sm:$0xff] %vm99_vm0, %v1818_v0 }
  0x71   : > { %288 = vst.msk [vmem:[%s1820_s19 + $0x5e0] sm:$0xff] %vm99_vm0, %v1818_v0  ;;  %289 = vst.msk [vmem:[%s1820_s19 + $0x5e8] sm:$0xff] %vm99_vm0, %v1818_v0 }
  0x72   : > { %290 = vst.msk [vmem:[%s1820_s19 + $0x5f0] sm:$0xff] %vm99_vm0, %v1818_v0  ;;  %291 = vst.msk [vmem:[%s1820_s19 + $0x5f8] sm:$0xff] %vm99_vm0, %v1818_v0 }
  0x73   : > { %292 = vst.msk [vmem:[%s1820_s19 + $0x600] sm:$0xff] %vm99_vm0, %v1818_v0  ;;  %293 = vst.msk [vmem:[%s1820_s19 + $0x608] sm:$0xff] %vm99_vm0, %v1818_v0 }
  0x74   : > { %294 = vst.msk [vmem:[%s1820_s19 + $0x610] sm:$0xff] %vm99_vm0, %v1818_v0  ;;  %295 = vst.msk [vmem:[%s1820_s19 + $0x618] sm:$0xff] %vm99_vm0, %v1818_v0 }
  0x75   : > { %296 = vst.msk [vmem:[%s1820_s19 + $0x620] sm:$0xff] %vm99_vm0, %v1818_v0  ;;  %297 = vst.msk [vmem:[%s1820_s19 + $0x628] sm:$0xff] %vm99_vm0, %v1818_v0 }
  0x76   : > { %298 = vst.msk [vmem:[%s1820_s19 + $0x630] sm:$0xff] %vm99_vm0, %v1818_v0  ;;  %299 = vst.msk [vmem:[%s1820_s19 + $0x638] sm:$0xff] %vm99_vm0, %v1818_v0 }
  0x77   : > { %300 = vst.msk [vmem:[%s1820_s19 + $0x640] sm:$0xff] %vm99_vm0, %v1818_v0  ;;  %301 = vst.msk [vmem:[%s1820_s19 + $0x648] sm:$0xff] %vm99_vm0, %v1818_v0 }
  0x78   : > { %302 = vst.msk [vmem:[%s1820_s19 + $0x650] sm:$0xff] %vm99_vm0, %v1818_v0  ;;  %303 = vst.msk [vmem:[%s1820_s19 + $0x658] sm:$0xff] %vm99_vm0, %v1818_v0 }
  0x79   : > { %304 = vst.msk [vmem:[%s1820_s19 + $0x660] sm:$0xff] %vm99_vm0, %v1818_v0  ;;  %305 = vst.msk [vmem:[%s1820_s19 + $0x668] sm:$0xff] %vm99_vm0, %v1818_v0 }
  0x7a   : > { %306 = vst.msk [vmem:[%s1820_s19 + $0x670] sm:$0xff] %vm99_vm0, %v1818_v0  ;;  %307 = vst.msk [vmem:[%s1820_s19 + $0x678] sm:$0xff] %vm99_vm0, %v1818_v0 }
  0x7b   : > { %308 = vst.msk [vmem:[%s1820_s19 + $0x680] sm:$0xff] %vm99_vm0, %v1818_v0  ;;  %309 = vst.msk [vmem:[%s1820_s19 + $0x688] sm:$0xff] %vm99_vm0, %v1818_v0 }
  0x7c   : > { %310 = vst.msk [vmem:[%s1820_s19 + $0x690] sm:$0xff] %vm99_vm0, %v1818_v0  ;;  %311 = vst.msk [vmem:[%s1820_s19 + $0x698] sm:$0xff] %vm99_vm0, %v1818_v0 }
  0x7d   : > { %312 = vst.msk [vmem:[%s1820_s19 + $0x6a0] sm:$0xff] %vm99_vm0, %v1818_v0  ;;  %313 = vst.msk [vmem:[%s1820_s19 + $0x6a8] sm:$0xff] %vm99_vm0, %v1818_v0 }
  0x7e   : > { %314 = vst.msk [vmem:[%s1820_s19 + $0x6b0] sm:$0xff] %vm99_vm0, %v1818_v0  ;;  %315 = vst.msk [vmem:[%s1820_s19 + $0x6b8] sm:$0xff] %vm99_vm0, %v1818_v0 }
  0x7f   : > { %316 = vst.msk [vmem:[%s1820_s19 + $0x6c0] sm:$0xff] %vm99_vm0, %v1818_v0  ;;  %317 = vst.msk [vmem:[%s1820_s19 + $0x6c8] sm:$0xff] %vm99_vm0, %v1818_v0 }
  0x80   : > { %318 = vst.msk [vmem:[%s1820_s19 + $0x6d0] sm:$0xff] %vm99_vm0, %v1818_v0  ;;  %319 = vst.msk [vmem:[%s1820_s19 + $0x6d8] sm:$0xff] %vm99_vm0, %v1818_v0 }
  0x81   : > { %320 = vst.msk [vmem:[%s1820_s19 + $0x6e0] sm:$0xff] %vm99_vm0, %v1818_v0  ;;  %321 = vst.msk [vmem:[%s1820_s19 + $0x6e8] sm:$0xff] %vm99_vm0, %v1818_v0 }
  0x82   : > { %322 = vst.msk [vmem:[%s1820_s19 + $0x6f0] sm:$0xff] %vm99_vm0, %v1818_v0  ;;  %323 = vst.msk [vmem:[%s1820_s19 + $0x6f8] sm:$0xff] %vm99_vm0, %v1818_v0 }
  0x83   : > { %324 = vst.msk [vmem:[%s1820_s19 + $0x700] sm:$0xff] %vm99_vm0, %v1818_v0  ;;  %325 = vst.msk [vmem:[%s1820_s19 + $0x708] sm:$0xff] %vm99_vm0, %v1818_v0 }
  0x84   : > { %326 = vst.msk [vmem:[%s1820_s19 + $0x710] sm:$0xff] %vm99_vm0, %v1818_v0  ;;  %327 = vst.msk [vmem:[%s1820_s19 + $0x718] sm:$0xff] %vm99_vm0, %v1818_v0 }
  0x85   : > { %328 = vst.msk [vmem:[%s1820_s19 + $0x720] sm:$0xff] %vm99_vm0, %v1818_v0  ;;  %329 = vst.msk [vmem:[%s1820_s19 + $0x728] sm:$0xff] %vm99_vm0, %v1818_v0 }
  0x86   : > { %330 = vst.msk [vmem:[%s1820_s19 + $0x730] sm:$0xff] %vm99_vm0, %v1818_v0  ;;  %331 = vst.msk [vmem:[%s1820_s19 + $0x738] sm:$0xff] %vm99_vm0, %v1818_v0 }
  0x87   : > { %332 = vst.msk [vmem:[%s1820_s19 + $0x740] sm:$0xff] %vm99_vm0, %v1818_v0  ;;  %333 = vst.msk [vmem:[%s1820_s19 + $0x748] sm:$0xff] %vm99_vm0, %v1818_v0 }
  0x88   : > { %334 = vst.msk [vmem:[%s1820_s19 + $0x750] sm:$0xff] %vm99_vm0, %v1818_v0  ;;  %335 = vst.msk [vmem:[%s1820_s19 + $0x758] sm:$0xff] %vm99_vm0, %v1818_v0 }
  0x89   : > { %336 = vst.msk [vmem:[%s1820_s19 + $0x760] sm:$0xff] %vm99_vm0, %v1818_v0  ;;  %337 = vst.msk [vmem:[%s1820_s19 + $0x768] sm:$0xff] %vm99_vm0, %v1818_v0 }
  0x8a   : > { %338 = vst.msk [vmem:[%s1820_s19 + $0x770] sm:$0xff] %vm99_vm0, %v1818_v0  ;;  %339 = vst.msk [vmem:[%s1820_s19 + $0x778] sm:$0xff] %vm99_vm0, %v1818_v0 }
  0x8b   : > { %340 = vst.msk [vmem:[%s1820_s19 + $0x780] sm:$0xff] %vm99_vm0, %v1818_v0  ;;  %341 = vst.msk [vmem:[%s1820_s19 + $0x788] sm:$0xff] %vm99_vm0, %v1818_v0 }
  0x8c   : > { %342 = vst.msk [vmem:[%s1820_s19 + $0x790] sm:$0xff] %vm99_vm0, %v1818_v0  ;;  %343 = vst.msk [vmem:[%s1820_s19 + $0x798] sm:$0xff] %vm99_vm0, %v1818_v0 }
  0x8d   : > { %344 = vst.msk [vmem:[%s1820_s19 + $0x7a0] sm:$0xff] %vm99_vm0, %v1818_v0  ;;  %345 = vst.msk [vmem:[%s1820_s19 + $0x7a8] sm:$0xff] %vm99_vm0, %v1818_v0 }
  0x8e   : > { %346 = vst.msk [vmem:[%s1820_s19 + $0x7b0] sm:$0xff] %vm99_vm0, %v1818_v0  ;;  %347 = vst.msk [vmem:[%s1820_s19 + $0x7b8] sm:$0xff] %vm99_vm0, %v1818_v0 }
  0x8f   : > { %348 = vst.msk [vmem:[%s1820_s19 + $0x7c0] sm:$0xff] %vm99_vm0, %v1818_v0  ;;  %349 = vst.msk [vmem:[%s1820_s19 + $0x7c8] sm:$0xff] %vm99_vm0, %v1818_v0 }
  0x90   : > { %350 = vst.msk [vmem:[%s1820_s19 + $0x7d0] sm:$0xff] %vm99_vm0, %v1818_v0  ;;  %351 = vst.msk [vmem:[%s1820_s19 + $0x7d8] sm:$0xff] %vm99_vm0, %v1818_v0 }
  0x91   : > { %352 = vst.msk [vmem:[%s1820_s19 + $0x7e0] sm:$0xff] %vm99_vm0, %v1818_v0  ;;  %353 = vst.msk [vmem:[%s1820_s19 + $0x7e8] sm:$0xff] %vm99_vm0, %v1818_v0 }
  0x92   : > { %354 = vst.msk [vmem:[%s1820_s19 + $0x7f0] sm:$0xff] %vm99_vm0, %v1818_v0  ;;  %355 = vst.msk [vmem:[%s1820_s19 + $0x7f8] sm:$0xff] %vm99_vm0, %v1818_v0 }
  0x93   : > { %356 = vst.msk [vmem:[%s1820_s19 + $0x800] sm:$0xff] %vm99_vm0, %v1818_v0  ;;  %357 = vst.msk [vmem:[%s1820_s19 + $0x808] sm:$0xff] %vm99_vm0, %v1818_v0 }
  0x94   : > { %358 = vst.msk [vmem:[%s1820_s19 + $0x810] sm:$0xff] %vm99_vm0, %v1818_v0  ;;  %359 = vst.msk [vmem:[%s1820_s19 + $0x818] sm:$0xff] %vm99_vm0, %v1818_v0 }
  0x95   : > { %360 = vst.msk [vmem:[%s1820_s19 + $0x820] sm:$0xff] %vm99_vm0, %v1818_v0  ;;  %361 = vst.msk [vmem:[%s1820_s19 + $0x828] sm:$0xff] %vm99_vm0, %v1818_v0 }
  0x96   : > { %362 = vst.msk [vmem:[%s1820_s19 + $0x830] sm:$0xff] %vm99_vm0, %v1818_v0  ;;  %363 = vst.msk [vmem:[%s1820_s19 + $0x838] sm:$0xff] %vm99_vm0, %v1818_v0 }
  0x97   : > { %364 = vst.msk [vmem:[%s1820_s19 + $0x840] sm:$0xff] %vm99_vm0, %v1818_v0  ;;  %365 = vst.msk [vmem:[%s1820_s19 + $0x848] sm:$0xff] %vm99_vm0, %v1818_v0 }
  0x98   : > { %366 = vst.msk [vmem:[%s1820_s19 + $0x850] sm:$0xff] %vm99_vm0, %v1818_v0  ;;  %367 = vst.msk [vmem:[%s1820_s19 + $0x858] sm:$0xff] %vm99_vm0, %v1818_v0 }
  0x99   : > { %368 = vst.msk [vmem:[%s1820_s19 + $0x860] sm:$0xff] %vm99_vm0, %v1818_v0  ;;  %369 = vst.msk [vmem:[%s1820_s19 + $0x868] sm:$0xff] %vm99_vm0, %v1818_v0 }
  0x9a   : > { %370 = vst.msk [vmem:[%s1820_s19 + $0x870] sm:$0xff] %vm99_vm0, %v1818_v0  ;;  %371 = vst.msk [vmem:[%s1820_s19 + $0x878] sm:$0xff] %vm99_vm0, %v1818_v0 }
  0x9b   : > { %372 = vst.msk [vmem:[%s1820_s19 + $0x880] sm:$0xff] %vm99_vm0, %v1818_v0  ;;  %373 = vst.msk [vmem:[%s1820_s19 + $0x888] sm:$0xff] %vm99_vm0, %v1818_v0 }
  0x9c   : > { %374 = vst.msk [vmem:[%s1820_s19 + $0x890] sm:$0xff] %vm99_vm0, %v1818_v0  ;;  %375 = vst.msk [vmem:[%s1820_s19 + $0x898] sm:$0xff] %vm99_vm0, %v1818_v0 }
  0x9d   : > { %376 = vst.msk [vmem:[%s1820_s19 + $0x8a0] sm:$0xff] %vm99_vm0, %v1818_v0  ;;  %377 = vst.msk [vmem:[%s1820_s19 + $0x8a8] sm:$0xff] %vm99_vm0, %v1818_v0 }
  0x9e   : > { %378 = vst.msk [vmem:[%s1820_s19 + $0x8b0] sm:$0xff] %vm99_vm0, %v1818_v0  ;;  %379 = vst.msk [vmem:[%s1820_s19 + $0x8b8] sm:$0xff] %vm99_vm0, %v1818_v0 }
  0x9f   : > { %380 = vst.msk [vmem:[%s1820_s19 + $0x8c0] sm:$0xff] %vm99_vm0, %v1818_v0  ;;  %381 = vst.msk [vmem:[%s1820_s19 + $0x8c8] sm:$0xff] %vm99_vm0, %v1818_v0 }
  0xa0   : > { %382 = vst.msk [vmem:[%s1820_s19 + $0x8d0] sm:$0xff] %vm99_vm0, %v1818_v0  ;;  %383 = vst.msk [vmem:[%s1820_s19 + $0x8d8] sm:$0xff] %vm99_vm0, %v1818_v0 }
  0xa1   : > { %384 = vst.msk [vmem:[%s1820_s19 + $0x8e0] sm:$0xff] %vm99_vm0, %v1818_v0  ;;  %385 = vst.msk [vmem:[%s1820_s19 + $0x8e8] sm:$0xff] %vm99_vm0, %v1818_v0 }
  0xa2   : > { %386 = vst.msk [vmem:[%s1820_s19 + $0x8f0] sm:$0xff] %vm99_vm0, %v1818_v0  ;;  %387 = vst.msk [vmem:[%s1820_s19 + $0x8f8] sm:$0xff] %vm99_vm0, %v1818_v0 }
  0xa3   : > { %388 = vst.msk [vmem:[%s1820_s19 + $0x900] sm:$0xff] %vm99_vm0, %v1818_v0  ;;  %389 = vst.msk [vmem:[%s1820_s19 + $0x908] sm:$0xff] %vm99_vm0, %v1818_v0 }
  0xa4   : > { %390 = vst.msk [vmem:[%s1820_s19 + $0x910] sm:$0xff] %vm99_vm0, %v1818_v0  ;;  %391 = vst.msk [vmem:[%s1820_s19 + $0x918] sm:$0xff] %vm99_vm0, %v1818_v0 }
  0xa5   : > { %392 = vst.msk [vmem:[%s1820_s19 + $0x920] sm:$0xff] %vm99_vm0, %v1818_v0  ;;  %393 = vst.msk [vmem:[%s1820_s19 + $0x928] sm:$0xff] %vm99_vm0, %v1818_v0 }
  0xa6   : > { %394 = vst.msk [vmem:[%s1820_s19 + $0x930] sm:$0xff] %vm99_vm0, %v1818_v0  ;;  %395 = vst.msk [vmem:[%s1820_s19 + $0x938] sm:$0xff] %vm99_vm0, %v1818_v0 }
  0xa7   : > { %396 = vst.msk [vmem:[%s1820_s19 + $0x940] sm:$0xff] %vm99_vm0, %v1818_v0  ;;  %397 = vst.msk [vmem:[%s1820_s19 + $0x948] sm:$0xff] %vm99_vm0, %v1818_v0 }
  0xa8   : > { %398 = vst.msk [vmem:[%s1820_s19 + $0x950] sm:$0xff] %vm99_vm0, %v1818_v0  ;;  %399 = vst.msk [vmem:[%s1820_s19 + $0x958] sm:$0xff] %vm99_vm0, %v1818_v0 }
  0xa9   : > { %400 = vst.msk [vmem:[%s1820_s19 + $0x960] sm:$0xff] %vm99_vm0, %v1818_v0  ;;  %401 = vst.msk [vmem:[%s1820_s19 + $0x968] sm:$0xff] %vm99_vm0, %v1818_v0 }
  0xaa   : > { %402 = vst.msk [vmem:[%s1820_s19 + $0x970] sm:$0xff] %vm99_vm0, %v1818_v0  ;;  %403 = vst.msk [vmem:[%s1820_s19 + $0x978] sm:$0xff] %vm99_vm0, %v1818_v0 }
  0xab   : > { %404 = vst.msk [vmem:[%s1820_s19 + $0x980] sm:$0xff] %vm99_vm0, %v1818_v0  ;;  %405 = vst.msk [vmem:[%s1820_s19 + $0x988] sm:$0xff] %vm99_vm0, %v1818_v0 }
  0xac   : > { %406 = vst.msk [vmem:[%s1820_s19 + $0x990] sm:$0xff] %vm99_vm0, %v1818_v0  ;;  %407 = vst.msk [vmem:[%s1820_s19 + $0x998] sm:$0xff] %vm99_vm0, %v1818_v0 }
  0xad   : > { %408 = vst.msk [vmem:[%s1820_s19 + $0x9a0] sm:$0xff] %vm99_vm0, %v1818_v0  ;;  %409 = vst.msk [vmem:[%s1820_s19 + $0x9a8] sm:$0xff] %vm99_vm0, %v1818_v0 }
  0xae   : > { %410 = vst.msk [vmem:[%s1820_s19 + $0x9b0] sm:$0xff] %vm99_vm0, %v1818_v0  ;;  %411 = vst.msk [vmem:[%s1820_s19 + $0x9b8] sm:$0xff] %vm99_vm0, %v1818_v0 }
  0xaf   : > { %412 = vst.msk [vmem:[%s1820_s19 + $0x9c0] sm:$0xff] %vm99_vm0, %v1818_v0  ;;  %413 = vst.msk [vmem:[%s1820_s19 + $0x9c8] sm:$0xff] %vm99_vm0, %v1818_v0 }
  0xb0   : > { %414 = vst.msk [vmem:[%s1820_s19 + $0x9d0] sm:$0xff] %vm99_vm0, %v1818_v0  ;;  %415 = vst.msk [vmem:[%s1820_s19 + $0x9d8] sm:$0xff] %vm99_vm0, %v1818_v0 }
  0xb1   : > { %416 = vst.msk [vmem:[%s1820_s19 + $0x9e0] sm:$0xff] %vm99_vm0, %v1818_v0  ;;  %417 = vst.msk [vmem:[%s1820_s19 + $0x9e8] sm:$0xff] %vm99_vm0, %v1818_v0 }
  0xb2   : > { %418 = vst.msk [vmem:[%s1820_s19 + $0x9f0] sm:$0xff] %vm99_vm0, %v1818_v0  ;;  %419 = vst.msk [vmem:[%s1820_s19 + $0x9f8] sm:$0xff] %vm99_vm0, %v1818_v0 }
  0xb3   : > { %420 = vst.msk [vmem:[%s1820_s19 + $0xa00] sm:$0xff] %vm99_vm0, %v1818_v0  ;;  %421 = vst.msk [vmem:[%s1820_s19 + $0xa08] sm:$0xff] %vm99_vm0, %v1818_v0 }
  0xb4   : > { %422 = vst.msk [vmem:[%s1820_s19 + $0xa10] sm:$0xff] %vm99_vm0, %v1818_v0  ;;  %423 = vst.msk [vmem:[%s1820_s19 + $0xa18] sm:$0xff] %vm99_vm0, %v1818_v0 }
  0xb5   : > { %424 = vst.msk [vmem:[%s1820_s19 + $0xa20] sm:$0xff] %vm99_vm0, %v1818_v0  ;;  %425 = vst.msk [vmem:[%s1820_s19 + $0xa28] sm:$0xff] %vm99_vm0, %v1818_v0 }
  0xb6   : > { %426 = vst.msk [vmem:[%s1820_s19 + $0xa30] sm:$0xff] %vm99_vm0, %v1818_v0  ;;  %427 = vst.msk [vmem:[%s1820_s19 + $0xa38] sm:$0xff] %vm99_vm0, %v1818_v0 }
  0xb7   : > { %428 = vst.msk [vmem:[%s1820_s19 + $0xa40] sm:$0xff] %vm99_vm0, %v1818_v0  ;;  %429 = vst.msk [vmem:[%s1820_s19 + $0xa48] sm:$0xff] %vm99_vm0, %v1818_v0 }
  0xb8   : > { %430 = vst.msk [vmem:[%s1820_s19 + $0xa50] sm:$0xff] %vm99_vm0, %v1818_v0  ;;  %431 = vst.msk [vmem:[%s1820_s19 + $0xa58] sm:$0xff] %vm99_vm0, %v1818_v0 }
  0xb9   : > { %432 = vst.msk [vmem:[%s1820_s19 + $0xa60] sm:$0xff] %vm99_vm0, %v1818_v0  ;;  %433 = vst.msk [vmem:[%s1820_s19 + $0xa68] sm:$0xff] %vm99_vm0, %v1818_v0 }
  0xba   : > { %434 = vst.msk [vmem:[%s1820_s19 + $0xa70] sm:$0xff] %vm99_vm0, %v1818_v0  ;;  %435 = vst.msk [vmem:[%s1820_s19 + $0xa78] sm:$0xff] %vm99_vm0, %v1818_v0 }
  0xbb   : > { %436 = vst.msk [vmem:[%s1820_s19 + $0xa80] sm:$0xff] %vm99_vm0, %v1818_v0  ;;  %437 = vst.msk [vmem:[%s1820_s19 + $0xa88] sm:$0xff] %vm99_vm0, %v1818_v0 }
  0xbc   : > { %438 = vst.msk [vmem:[%s1820_s19 + $0xa90] sm:$0xff] %vm99_vm0, %v1818_v0  ;;  %439 = vst.msk [vmem:[%s1820_s19 + $0xa98] sm:$0xff] %vm99_vm0, %v1818_v0 }
  0xbd   : > { %440 = vst.msk [vmem:[%s1820_s19 + $0xaa0] sm:$0xff] %vm99_vm0, %v1818_v0  ;;  %441 = vst.msk [vmem:[%s1820_s19 + $0xaa8] sm:$0xff] %vm99_vm0, %v1818_v0 }
  0xbe   : > { %442 = vst.msk [vmem:[%s1820_s19 + $0xab0] sm:$0xff] %vm99_vm0, %v1818_v0  ;;  %443 = vst.msk [vmem:[%s1820_s19 + $0xab8] sm:$0xff] %vm99_vm0, %v1818_v0 }
  0xbf   : > { %444 = vst.msk [vmem:[%s1820_s19 + $0xac0] sm:$0xff] %vm99_vm0, %v1818_v0  ;;  %445 = vst.msk [vmem:[%s1820_s19 + $0xac8] sm:$0xff] %vm99_vm0, %v1818_v0 }
  0xc0   : > { %446 = vst.msk [vmem:[%s1820_s19 + $0xad0] sm:$0xff] %vm99_vm0, %v1818_v0  ;;  %447 = vst.msk [vmem:[%s1820_s19 + $0xad8] sm:$0xff] %vm99_vm0, %v1818_v0 }
  0xc1   : > { %448 = vst.msk [vmem:[%s1820_s19 + $0xae0] sm:$0xff] %vm99_vm0, %v1818_v0  ;;  %449 = vst.msk [vmem:[%s1820_s19 + $0xae8] sm:$0xff] %vm99_vm0, %v1818_v0 }
  0xc2   : > { %450 = vst.msk [vmem:[%s1820_s19 + $0xaf0] sm:$0xff] %vm99_vm0, %v1818_v0  ;;  %451 = vst.msk [vmem:[%s1820_s19 + $0xaf8] sm:$0xff] %vm99_vm0, %v1818_v0 }
  0xc3   : > { %452 = vst.msk [vmem:[%s1820_s19 + $0xb00] sm:$0xff] %vm99_vm0, %v1818_v0  ;;  %453 = vst.msk [vmem:[%s1820_s19 + $0xb08] sm:$0xff] %vm99_vm0, %v1818_v0 }
  0xc4   : > { %454 = vst.msk [vmem:[%s1820_s19 + $0xb10] sm:$0xff] %vm99_vm0, %v1818_v0  ;;  %455 = vst.msk [vmem:[%s1820_s19 + $0xb18] sm:$0xff] %vm99_vm0, %v1818_v0 }
  0xc5   : > { %456 = vst.msk [vmem:[%s1820_s19 + $0xb20] sm:$0xff] %vm99_vm0, %v1818_v0  ;;  %457 = vst.msk [vmem:[%s1820_s19 + $0xb28] sm:$0xff] %vm99_vm0, %v1818_v0 }
  0xc6   : > { %458 = vst.msk [vmem:[%s1820_s19 + $0xb30] sm:$0xff] %vm99_vm0, %v1818_v0  ;;  %459 = vst.msk [vmem:[%s1820_s19 + $0xb38] sm:$0xff] %vm99_vm0, %v1818_v0 }
  0xc7   : > { %460 = vst.msk [vmem:[%s1820_s19 + $0xb40] sm:$0xff] %vm99_vm0, %v1818_v0  ;;  %461 = vst.msk [vmem:[%s1820_s19 + $0xb48] sm:$0xff] %vm99_vm0, %v1818_v0 }
  0xc8   : > { %462 = vst.msk [vmem:[%s1820_s19 + $0xb50] sm:$0xff] %vm99_vm0, %v1818_v0  ;;  %463 = vst.msk [vmem:[%s1820_s19 + $0xb58] sm:$0xff] %vm99_vm0, %v1818_v0 }
  0xc9   : > { %464 = vst.msk [vmem:[%s1820_s19 + $0xb60] sm:$0xff] %vm99_vm0, %v1818_v0  ;;  %465 = vst.msk [vmem:[%s1820_s19 + $0xb68] sm:$0xff] %vm99_vm0, %v1818_v0 }
  0xca   : > { %466 = vst.msk [vmem:[%s1820_s19 + $0xb70] sm:$0xff] %vm99_vm0, %v1818_v0  ;;  %467 = vst.msk [vmem:[%s1820_s19 + $0xb78] sm:$0xff] %vm99_vm0, %v1818_v0 }
  0xcb   : > { %468 = vst.msk [vmem:[%s1820_s19 + $0xb80] sm:$0xff] %vm99_vm0, %v1818_v0  ;;  %469 = vst.msk [vmem:[%s1820_s19 + $0xb88] sm:$0xff] %vm99_vm0, %v1818_v0 }
  0xcc   : > { %470 = vst.msk [vmem:[%s1820_s19 + $0xb90] sm:$0xff] %vm99_vm0, %v1818_v0  ;;  %471 = vst.msk [vmem:[%s1820_s19 + $0xb98] sm:$0xff] %vm99_vm0, %v1818_v0 }
  0xcd   : > { %472 = vst.msk [vmem:[%s1820_s19 + $0xba0] sm:$0xff] %vm99_vm0, %v1818_v0  ;;  %473 = vst.msk [vmem:[%s1820_s19 + $0xba8] sm:$0xff] %vm99_vm0, %v1818_v0 }
  0xce   : > { %474 = vst.msk [vmem:[%s1820_s19 + $0xbb0] sm:$0xff] %vm99_vm0, %v1818_v0  ;;  %475 = vst.msk [vmem:[%s1820_s19 + $0xbb8] sm:$0xff] %vm99_vm0, %v1818_v0 }
  0xcf   : > { %476 = vst.msk [vmem:[%s1820_s19 + $0xbc0] sm:$0xff] %vm99_vm0, %v1818_v0  ;;  %477 = vst.msk [vmem:[%s1820_s19 + $0xbc8] sm:$0xff] %vm99_vm0, %v1818_v0 }
  0xd0   : > { %478 = vst.msk [vmem:[%s1820_s19 + $0xbd0] sm:$0xff] %vm99_vm0, %v1818_v0  ;;  %479 = vst.msk [vmem:[%s1820_s19 + $0xbd8] sm:$0xff] %vm99_vm0, %v1818_v0 }
  0xd1   : > { %480 = vst.msk [vmem:[%s1820_s19 + $0xbe0] sm:$0xff] %vm99_vm0, %v1818_v0  ;;  %481 = vst.msk [vmem:[%s1820_s19 + $0xbe8] sm:$0xff] %vm99_vm0, %v1818_v0 }
  0xd2   : > { %482 = vst.msk [vmem:[%s1820_s19 + $0xbf0] sm:$0xff] %vm99_vm0, %v1818_v0  ;;  %483 = vst.msk [vmem:[%s1820_s19 + $0xbf8] sm:$0xff] %vm99_vm0, %v1818_v0 }
  0xd3   : > { %484 = vst.msk [vmem:[%s1820_s19 + $0xc00] sm:$0xff] %vm99_vm0, %v1818_v0  ;;  %485 = vst.msk [vmem:[%s1820_s19 + $0xc08] sm:$0xff] %vm99_vm0, %v1818_v0 }
  0xd4   : > { %486 = vst.msk [vmem:[%s1820_s19 + $0xc10] sm:$0xff] %vm99_vm0, %v1818_v0  ;;  %487 = vst.msk [vmem:[%s1820_s19 + $0xc18] sm:$0xff] %vm99_vm0, %v1818_v0 }
  0xd5   : > { %488 = vst.msk [vmem:[%s1820_s19 + $0xc20] sm:$0xff] %vm99_vm0, %v1818_v0  ;;  %489 = vst.msk [vmem:[%s1820_s19 + $0xc28] sm:$0xff] %vm99_vm0, %v1818_v0 }
  0xd6   : > { %490 = vst.msk [vmem:[%s1820_s19 + $0xc30] sm:$0xff] %vm99_vm0, %v1818_v0  ;;  %491 = vst.msk [vmem:[%s1820_s19 + $0xc38] sm:$0xff] %vm99_vm0, %v1818_v0 }
  0xd7   : > { %492 = vst.msk [vmem:[%s1820_s19 + $0xc40] sm:$0xff] %vm99_vm0, %v1818_v0  ;;  %493 = vst.msk [vmem:[%s1820_s19 + $0xc48] sm:$0xff] %vm99_vm0, %v1818_v0 }
  0xd8   : > { %494 = vst.msk [vmem:[%s1820_s19 + $0xc50] sm:$0xff] %vm99_vm0, %v1818_v0  ;;  %495 = vst.msk [vmem:[%s1820_s19 + $0xc58] sm:$0xff] %vm99_vm0, %v1818_v0 }
  0xd9   : > { %496 = vst.msk [vmem:[%s1820_s19 + $0xc60] sm:$0xff] %vm99_vm0, %v1818_v0  ;;  %497 = vst.msk [vmem:[%s1820_s19 + $0xc68] sm:$0xff] %vm99_vm0, %v1818_v0 }
  0xda   : > { %498 = vst.msk [vmem:[%s1820_s19 + $0xc70] sm:$0xff] %vm99_vm0, %v1818_v0  ;;  %499 = vst.msk [vmem:[%s1820_s19 + $0xc78] sm:$0xff] %vm99_vm0, %v1818_v0 }
  0xdb   : > { %500 = vst.msk [vmem:[%s1820_s19 + $0xc80] sm:$0xff] %vm99_vm0, %v1818_v0  ;;  %501 = vst.msk [vmem:[%s1820_s19 + $0xc88] sm:$0xff] %vm99_vm0, %v1818_v0 }
  0xdc   : > { %502 = vst.msk [vmem:[%s1820_s19 + $0xc90] sm:$0xff] %vm99_vm0, %v1818_v0  ;;  %503 = vst.msk [vmem:[%s1820_s19 + $0xc98] sm:$0xff] %vm99_vm0, %v1818_v0 }
  0xdd   : > { %504 = vst.msk [vmem:[%s1820_s19 + $0xca0] sm:$0xff] %vm99_vm0, %v1818_v0  ;;  %505 = vst.msk [vmem:[%s1820_s19 + $0xca8] sm:$0xff] %vm99_vm0, %v1818_v0 }
  0xde   : > { %506 = vst.msk [vmem:[%s1820_s19 + $0xcb0] sm:$0xff] %vm99_vm0, %v1818_v0  ;;  %507 = vst.msk [vmem:[%s1820_s19 + $0xcb8] sm:$0xff] %vm99_vm0, %v1818_v0 }
  0xdf   : > { %508 = vst.msk [vmem:[%s1820_s19 + $0xcc0] sm:$0xff] %vm99_vm0, %v1818_v0  ;;  %509 = vst.msk [vmem:[%s1820_s19 + $0xcc8] sm:$0xff] %vm99_vm0, %v1818_v0 }
  0xe0   : > { %510 = vst.msk [vmem:[%s1820_s19 + $0xcd0] sm:$0xff] %vm99_vm0, %v1818_v0  ;;  %511 = vst.msk [vmem:[%s1820_s19 + $0xcd8] sm:$0xff] %vm99_vm0, %v1818_v0 }
  0xe1   : > { %512 = vst.msk [vmem:[%s1820_s19 + $0xce0] sm:$0xff] %vm99_vm0, %v1818_v0  ;;  %513 = vst.msk [vmem:[%s1820_s19 + $0xce8] sm:$0xff] %vm99_vm0, %v1818_v0 }
  0xe2   : > { %514 = vst.msk [vmem:[%s1820_s19 + $0xcf0] sm:$0xff] %vm99_vm0, %v1818_v0  ;;  %515 = vst.msk [vmem:[%s1820_s19 + $0xcf8] sm:$0xff] %vm99_vm0, %v1818_v0 }
  0xe3   : > { %516 = vst.msk [vmem:[%s1820_s19 + $0xd00] sm:$0xff] %vm99_vm0, %v1818_v0  ;;  %517 = vst.msk [vmem:[%s1820_s19 + $0xd08] sm:$0xff] %vm99_vm0, %v1818_v0 }
  0xe4   : > { %518 = vst.msk [vmem:[%s1820_s19 + $0xd10] sm:$0xff] %vm99_vm0, %v1818_v0  ;;  %519 = vst.msk [vmem:[%s1820_s19 + $0xd18] sm:$0xff] %vm99_vm0, %v1818_v0 }
  0xe5   : > { %520 = vst.msk [vmem:[%s1820_s19 + $0xd20] sm:$0xff] %vm99_vm0, %v1818_v0  ;;  %521 = vst.msk [vmem:[%s1820_s19 + $0xd28] sm:$0xff] %vm99_vm0, %v1818_v0 }
  0xe6   : > { %522 = vst.msk [vmem:[%s1820_s19 + $0xd30] sm:$0xff] %vm99_vm0, %v1818_v0  ;;  %523 = vst.msk [vmem:[%s1820_s19 + $0xd38] sm:$0xff] %vm99_vm0, %v1818_v0 }
  0xe7   : > { %524 = vst.msk [vmem:[%s1820_s19 + $0xd40] sm:$0xff] %vm99_vm0, %v1818_v0  ;;  %525 = vst.msk [vmem:[%s1820_s19 + $0xd48] sm:$0xff] %vm99_vm0, %v1818_v0 }
  0xe8   : > { %526 = vst.msk [vmem:[%s1820_s19 + $0xd50] sm:$0xff] %vm99_vm0, %v1818_v0  ;;  %527 = vst.msk [vmem:[%s1820_s19 + $0xd58] sm:$0xff] %vm99_vm0, %v1818_v0 }
  0xe9   : > { %528 = vst.msk [vmem:[%s1820_s19 + $0xd60] sm:$0xff] %vm99_vm0, %v1818_v0  ;;  %529 = vst.msk [vmem:[%s1820_s19 + $0xd68] sm:$0xff] %vm99_vm0, %v1818_v0 }
  0xea   : > { %530 = vst.msk [vmem:[%s1820_s19 + $0xd70] sm:$0xff] %vm99_vm0, %v1818_v0  ;;  %531 = vst.msk [vmem:[%s1820_s19 + $0xd78] sm:$0xff] %vm99_vm0, %v1818_v0 }
  0xeb   : > { %532 = vst.msk [vmem:[%s1820_s19 + $0xd80] sm:$0xff] %vm99_vm0, %v1818_v0  ;;  %533 = vst.msk [vmem:[%s1820_s19 + $0xd88] sm:$0xff] %vm99_vm0, %v1818_v0 }
  0xec   : > { %534 = vst.msk [vmem:[%s1820_s19 + $0xd90] sm:$0xff] %vm99_vm0, %v1818_v0  ;;  %535 = vst.msk [vmem:[%s1820_s19 + $0xd98] sm:$0xff] %vm99_vm0, %v1818_v0 }
  0xed   : > { %536 = vst.msk [vmem:[%s1820_s19 + $0xda0] sm:$0xff] %vm99_vm0, %v1818_v0  ;;  %537 = vst.msk [vmem:[%s1820_s19 + $0xda8] sm:$0xff] %vm99_vm0, %v1818_v0 }
  0xee   : > { %538 = vst.msk [vmem:[%s1820_s19 + $0xdb0] sm:$0xff] %vm99_vm0, %v1818_v0  ;;  %539 = vst.msk [vmem:[%s1820_s19 + $0xdb8] sm:$0xff] %vm99_vm0, %v1818_v0 }
  0xef   : > { %540 = vst.msk [vmem:[%s1820_s19 + $0xdc0] sm:$0xff] %vm99_vm0, %v1818_v0  ;;  %541 = vst.msk [vmem:[%s1820_s19 + $0xdc8] sm:$0xff] %vm99_vm0, %v1818_v0 }
  0xf0   : > { %542 = vst.msk [vmem:[%s1820_s19 + $0xdd0] sm:$0xff] %vm99_vm0, %v1818_v0  ;;  %543 = vst.msk [vmem:[%s1820_s19 + $0xdd8] sm:$0xff] %vm99_vm0, %v1818_v0 }
  0xf1   : > { %544 = vst.msk [vmem:[%s1820_s19 + $0xde0] sm:$0xff] %vm99_vm0, %v1818_v0  ;;  %545 = vst.msk [vmem:[%s1820_s19 + $0xde8] sm:$0xff] %vm99_vm0, %v1818_v0 }
  0xf2   : > { %546 = vst.msk [vmem:[%s1820_s19 + $0xdf0] sm:$0xff] %vm99_vm0, %v1818_v0  ;;  %547 = vst.msk [vmem:[%s1820_s19 + $0xdf8] sm:$0xff] %vm99_vm0, %v1818_v0 }
  0xf3   : > { %548 = vst.msk [vmem:[%s1820_s19 + $0xe00] sm:$0xff] %vm99_vm0, %v1818_v0  ;;  %549 = vst.msk [vmem:[%s1820_s19 + $0xe08] sm:$0xff] %vm99_vm0, %v1818_v0 }
  0xf4   : > { %550 = vst.msk [vmem:[%s1820_s19 + $0xe10] sm:$0xff] %vm99_vm0, %v1818_v0  ;;  %551 = vst.msk [vmem:[%s1820_s19 + $0xe18] sm:$0xff] %vm99_vm0, %v1818_v0 }
  0xf5   : > { %552 = vst.msk [vmem:[%s1820_s19 + $0xe20] sm:$0xff] %vm99_vm0, %v1818_v0  ;;  %553 = vst.msk [vmem:[%s1820_s19 + $0xe28] sm:$0xff] %vm99_vm0, %v1818_v0 }
  0xf6   : > { %554 = vst.msk [vmem:[%s1820_s19 + $0xe30] sm:$0xff] %vm99_vm0, %v1818_v0  ;;  %555 = vst.msk [vmem:[%s1820_s19 + $0xe38] sm:$0xff] %vm99_vm0, %v1818_v0 }
  0xf7   : > { %556 = vst.msk [vmem:[%s1820_s19 + $0xe40] sm:$0xff] %vm99_vm0, %v1818_v0  ;;  %557 = vst.msk [vmem:[%s1820_s19 + $0xe48] sm:$0xff] %vm99_vm0, %v1818_v0 }
  0xf8   : > { %558 = vst.msk [vmem:[%s1820_s19 + $0xe50] sm:$0xff] %vm99_vm0, %v1818_v0  ;;  %559 = vst.msk [vmem:[%s1820_s19 + $0xe58] sm:$0xff] %vm99_vm0, %v1818_v0 }
  0xf9   : > { %560 = vst.msk [vmem:[%s1820_s19 + $0xe60] sm:$0xff] %vm99_vm0, %v1818_v0  ;;  %561 = vst.msk [vmem:[%s1820_s19 + $0xe68] sm:$0xff] %vm99_vm0, %v1818_v0 }
  0xfa   : > { %562 = vst.msk [vmem:[%s1820_s19 + $0xe70] sm:$0xff] %vm99_vm0, %v1818_v0  ;;  %563 = vst.msk [vmem:[%s1820_s19 + $0xe78] sm:$0xff] %vm99_vm0, %v1818_v0 }
  0xfb   : > { %564 = vst.msk [vmem:[%s1820_s19 + $0xe80] sm:$0xff] %vm99_vm0, %v1818_v0  ;;  %565 = vst.msk [vmem:[%s1820_s19 + $0xe88] sm:$0xff] %vm99_vm0, %v1818_v0 }
  0xfc   : > { %566 = vst.msk [vmem:[%s1820_s19 + $0xe90] sm:$0xff] %vm99_vm0, %v1818_v0  ;;  %567 = vst.msk [vmem:[%s1820_s19 + $0xe98] sm:$0xff] %vm99_vm0, %v1818_v0 }
  0xfd   : > { %568 = vst.msk [vmem:[%s1820_s19 + $0xea0] sm:$0xff] %vm99_vm0, %v1818_v0  ;;  %569 = vst.msk [vmem:[%s1820_s19 + $0xea8] sm:$0xff] %vm99_vm0, %v1818_v0 }
  0xfe   : > { %570 = vst.msk [vmem:[%s1820_s19 + $0xeb0] sm:$0xff] %vm99_vm0, %v1818_v0  ;;  %571 = vst.msk [vmem:[%s1820_s19 + $0xeb8] sm:$0xff] %vm99_vm0, %v1818_v0 }
  0xff   : > { %572 = vst.msk [vmem:[%s1820_s19 + $0xec0] sm:$0xff] %vm99_vm0, %v1818_v0  ;;  %573 = vst.msk [vmem:[%s1820_s19 + $0xec8] sm:$0xff] %vm99_vm0, %v1818_v0 }
 0x100   : > { %574 = vst.msk [vmem:[%s1820_s19 + $0xed0] sm:$0xff] %vm99_vm0, %v1818_v0  ;;  %575 = vst.msk [vmem:[%s1820_s19 + $0xed8] sm:$0xff] %vm99_vm0, %v1818_v0 }
 0x101   : > { %576 = vst.msk [vmem:[%s1820_s19 + $0xee0] sm:$0xff] %vm99_vm0, %v1818_v0  ;;  %577 = vst.msk [vmem:[%s1820_s19 + $0xee8] sm:$0xff] %vm99_vm0, %v1818_v0 }
 0x102   : > { %578 = vst.msk [vmem:[%s1820_s19 + $0xef0] sm:$0xff] %vm99_vm0, %v1818_v0  ;;  %579 = vst.msk [vmem:[%s1820_s19 + $0xef8] sm:$0xff] %vm99_vm0, %v1818_v0 }
 0x103   : > { %580 = vst.msk [vmem:[%s1820_s19 + $0xf00] sm:$0xff] %vm99_vm0, %v1818_v0  ;;  %581 = vst.msk [vmem:[%s1820_s19 + $0xf08] sm:$0xff] %vm99_vm0, %v1818_v0 }
 0x104   : > { %582 = vst.msk [vmem:[%s1820_s19 + $0xf10] sm:$0xff] %vm99_vm0, %v1818_v0  ;;  %583 = vst.msk [vmem:[%s1820_s19 + $0xf18] sm:$0xff] %vm99_vm0, %v1818_v0 }
 0x105   : > { %584 = vst.msk [vmem:[%s1820_s19 + $0xf20] sm:$0xff] %vm99_vm0, %v1818_v0  ;;  %585 = vst.msk [vmem:[%s1820_s19 + $0xf28] sm:$0xff] %vm99_vm0, %v1818_v0 }
 0x106   : > { %586 = vst.msk [vmem:[%s1820_s19 + $0xf30] sm:$0xff] %vm99_vm0, %v1818_v0  ;;  %587 = vst.msk [vmem:[%s1820_s19 + $0xf38] sm:$0xff] %vm99_vm0, %v1818_v0 }
 0x107   : > { %588 = vst.msk [vmem:[%s1820_s19 + $0xf40] sm:$0xff] %vm99_vm0, %v1818_v0  ;;  %589 = vst.msk [vmem:[%s1820_s19 + $0xf48] sm:$0xff] %vm99_vm0, %v1818_v0 }
 0x108   : > { %590 = vst.msk [vmem:[%s1820_s19 + $0xf50] sm:$0xff] %vm99_vm0, %v1818_v0  ;;  %591 = vst.msk [vmem:[%s1820_s19 + $0xf58] sm:$0xff] %vm99_vm0, %v1818_v0 }
 0x109   : > { %592 = vst.msk [vmem:[%s1820_s19 + $0xf60] sm:$0xff] %vm99_vm0, %v1818_v0  ;;  %593 = vst.msk [vmem:[%s1820_s19 + $0xf68] sm:$0xff] %vm99_vm0, %v1818_v0 }
 0x10a   : > { %594 = vst.msk [vmem:[%s1820_s19 + $0xf70] sm:$0xff] %vm99_vm0, %v1818_v0  ;;  %595 = vst.msk [vmem:[%s1820_s19 + $0xf78] sm:$0xff] %vm99_vm0, %v1818_v0 }
 0x10b   : > { %596 = vst.msk [vmem:[%s1820_s19 + $0xf80] sm:$0xff] %vm99_vm0, %v1818_v0  ;;  %597 = vst.msk [vmem:[%s1820_s19 + $0xf88] sm:$0xff] %vm99_vm0, %v1818_v0 }
 0x10c   : > { %598 = vst.msk [vmem:[%s1820_s19 + $0xf90] sm:$0xff] %vm99_vm0, %v1818_v0  ;;  %599 = vst.msk [vmem:[%s1820_s19 + $0xf98] sm:$0xff] %vm99_vm0, %v1818_v0 }
 0x10d   : > { %600 = vst.msk [vmem:[%s1820_s19 + $0xfa0] sm:$0xff] %vm99_vm0, %v1818_v0  ;;  %601 = vst.msk [vmem:[%s1820_s19 + $0xfa8] sm:$0xff] %vm99_vm0, %v1818_v0 }
 0x10e   : > { %602 = vst.msk [vmem:[%s1820_s19 + $0xfb0] sm:$0xff] %vm99_vm0, %v1818_v0  ;;  %603 = vst.msk [vmem:[%s1820_s19 + $0xfb8] sm:$0xff] %vm99_vm0, %v1818_v0 }
 0x10f   : > { %604 = vst.msk [vmem:[%s1820_s19 + $0xfc0] sm:$0xff] %vm99_vm0, %v1818_v0  ;;  %605 = vst.msk [vmem:[%s1820_s19 + $0xfc8] sm:$0xff] %vm99_vm0, %v1818_v0 }
 0x110   : > { %606 = vst.msk [vmem:[%s1820_s19 + $0xfd0] sm:$0xff] %vm99_vm0, %v1818_v0  ;;  %607 = vst.msk [vmem:[%s1820_s19 + $0xfd8] sm:$0xff] %vm99_vm0, %v1818_v0 }
 0x111   : > { %608 = vst.msk [vmem:[%s1820_s19 + $0xfe0] sm:$0xff] %vm99_vm0, %v1818_v0  ;;  %609 = vst.msk [vmem:[%s1820_s19 + $0xfe8] sm:$0xff] %vm99_vm0, %v1818_v0 }
 0x112   : > { %610 = vst.msk [vmem:[%s1820_s19 + $0xff0] sm:$0xff] %vm99_vm0, %v1818_v0  ;;  %611 = vst.msk [vmem:[%s1820_s19 + $0xff8] sm:$0xff] %vm99_vm0, %v1818_v0 }
 0x113   : > { %612 = vst.msk [vmem:[%s1820_s19 + $0x1000] sm:$0xff] %vm99_vm0, %v1818_v0  ;;  %613 = vst.msk [vmem:[%s1820_s19 + $0x1008] sm:$0xff] %vm99_vm0, %v1818_v0 }
 0x114   : > { %614 = vst.msk [vmem:[%s1820_s19 + $0x1010] sm:$0xff] %vm99_vm0, %v1818_v0  ;;  %615 = vst.msk [vmem:[%s1820_s19 + $0x1018] sm:$0xff] %vm99_vm0, %v1818_v0 }
 0x115   : > { %616 = vst.msk [vmem:[%s1820_s19 + $0x1020] sm:$0xff] %vm99_vm0, %v1818_v0  ;;  %617 = vst.msk [vmem:[%s1820_s19 + $0x1028] sm:$0xff] %vm99_vm0, %v1818_v0 }
 0x116   : > { %618 = vst.msk [vmem:[%s1820_s19 + $0x1030] sm:$0xff] %vm99_vm0, %v1818_v0  ;;  %619 = vst.msk [vmem:[%s1820_s19 + $0x1038] sm:$0xff] %vm99_vm0, %v1818_v0 }
 0x117   : > { %620 = vst.msk [vmem:[%s1820_s19 + $0x1040] sm:$0xff] %vm99_vm0, %v1818_v0  ;;  %621 = vst.msk [vmem:[%s1820_s19 + $0x1048] sm:$0xff] %vm99_vm0, %v1818_v0 }
 0x118   : > { %622 = vst.msk [vmem:[%s1820_s19 + $0x1050] sm:$0xff] %vm99_vm0, %v1818_v0  ;;  %623 = vst.msk [vmem:[%s1820_s19 + $0x1058] sm:$0xff] %vm99_vm0, %v1818_v0 }
 0x119   : > { %624 = vst.msk [vmem:[%s1820_s19 + $0x1060] sm:$0xff] %vm99_vm0, %v1818_v0  ;;  %625 = vst.msk [vmem:[%s1820_s19 + $0x1068] sm:$0xff] %vm99_vm0, %v1818_v0 }
 0x11a   : > { %626 = vst.msk [vmem:[%s1820_s19 + $0x1070] sm:$0xff] %vm99_vm0, %v1818_v0  ;;  %627 = vst.msk [vmem:[%s1820_s19 + $0x1078] sm:$0xff] %vm99_vm0, %v1818_v0 }
 0x11b   : > { %628 = vst.msk [vmem:[%s1820_s19 + $0x1080] sm:$0xff] %vm99_vm0, %v1818_v0  ;;  %629 = vst.msk [vmem:[%s1820_s19 + $0x1088] sm:$0xff] %vm99_vm0, %v1818_v0 }
 0x11c   : > { %630 = vst.msk [vmem:[%s1820_s19 + $0x1090] sm:$0xff] %vm99_vm0, %v1818_v0  ;;  %631 = vst.msk [vmem:[%s1820_s19 + $0x1098] sm:$0xff] %vm99_vm0, %v1818_v0 }
 0x11d   : > { %632 = vst.msk [vmem:[%s1820_s19 + $0x10a0] sm:$0xff] %vm99_vm0, %v1818_v0  ;;  %633 = vst.msk [vmem:[%s1820_s19 + $0x10a8] sm:$0xff] %vm99_vm0, %v1818_v0 }
 0x11e   : > { %634 = vst.msk [vmem:[%s1820_s19 + $0x10b0] sm:$0xff] %vm99_vm0, %v1818_v0  ;;  %635 = vst.msk [vmem:[%s1820_s19 + $0x10b8] sm:$0xff] %vm99_vm0, %v1818_v0 }
 0x11f   : > { %636 = vst.msk [vmem:[%s1820_s19 + $0x10c0] sm:$0xff] %vm99_vm0, %v1818_v0  ;;  %637 = vst.msk [vmem:[%s1820_s19 + $0x10c8] sm:$0xff] %vm99_vm0, %v1818_v0 }
 0x120   : > { %638 = vst.msk [vmem:[%s1820_s19 + $0x10d0] sm:$0xff] %vm99_vm0, %v1818_v0  ;;  %639 = vst.msk [vmem:[%s1820_s19 + $0x10d8] sm:$0xff] %vm99_vm0, %v1818_v0 }
 0x121   : > { %640 = vst.msk [vmem:[%s1820_s19 + $0x10e0] sm:$0xff] %vm99_vm0, %v1818_v0  ;;  %641 = vst.msk [vmem:[%s1820_s19 + $0x10e8] sm:$0xff] %vm99_vm0, %v1818_v0 }
 0x122   : > { %642 = vst.msk [vmem:[%s1820_s19 + $0x10f0] sm:$0xff] %vm99_vm0, %v1818_v0  ;;  %643 = vst.msk [vmem:[%s1820_s19 + $0x10f8] sm:$0xff] %vm99_vm0, %v1818_v0 }
 0x123   : > { %644 = vst.msk [vmem:[%s1820_s19 + $0x1100] sm:$0xff] %vm99_vm0, %v1818_v0  ;;  %645 = vst.msk [vmem:[%s1820_s19 + $0x1108] sm:$0xff] %vm99_vm0, %v1818_v0 }
 0x124   : > { %646 = vst.msk [vmem:[%s1820_s19 + $0x1110] sm:$0xff] %vm99_vm0, %v1818_v0  ;;  %647 = vst.msk [vmem:[%s1820_s19 + $0x1118] sm:$0xff] %vm99_vm0, %v1818_v0 }
 0x125   : > { %648 = vst.msk [vmem:[%s1820_s19 + $0x1120] sm:$0xff] %vm99_vm0, %v1818_v0  ;;  %649 = vst.msk [vmem:[%s1820_s19 + $0x1128] sm:$0xff] %vm99_vm0, %v1818_v0 }
 0x126   : > { %650 = vst.msk [vmem:[%s1820_s19 + $0x1130] sm:$0xff] %vm99_vm0, %v1818_v0  ;;  %651 = vst.msk [vmem:[%s1820_s19 + $0x1138] sm:$0xff] %vm99_vm0, %v1818_v0 }
 0x127   : > { %652 = vst.msk [vmem:[%s1820_s19 + $0x1140] sm:$0xff] %vm99_vm0, %v1818_v0  ;;  %653 = vst.msk [vmem:[%s1820_s19 + $0x1148] sm:$0xff] %vm99_vm0, %v1818_v0 }
 0x128   : > { %654 = vst.msk [vmem:[%s1820_s19 + $0x1150] sm:$0xff] %vm99_vm0, %v1818_v0  ;;  %655 = vst.msk [vmem:[%s1820_s19 + $0x1158] sm:$0xff] %vm99_vm0, %v1818_v0 }
 0x129   : > { %656 = vst.msk [vmem:[%s1820_s19 + $0x1160] sm:$0xff] %vm99_vm0, %v1818_v0  ;;  %657 = vst.msk [vmem:[%s1820_s19 + $0x1168] sm:$0xff] %vm99_vm0, %v1818_v0 }
 0x12a   : > { %658 = vst.msk [vmem:[%s1820_s19 + $0x1170] sm:$0xff] %vm99_vm0, %v1818_v0  ;;  %659 = vst.msk [vmem:[%s1820_s19 + $0x1178] sm:$0xff] %vm99_vm0, %v1818_v0 }
 0x12b   : > { %660 = vst.msk [vmem:[%s1820_s19 + $0x1180] sm:$0xff] %vm99_vm0, %v1818_v0  ;;  %661 = vst.msk [vmem:[%s1820_s19 + $0x1188] sm:$0xff] %vm99_vm0, %v1818_v0 }
 0x12c   : > { %662 = vst.msk [vmem:[%s1820_s19 + $0x1190] sm:$0xff] %vm99_vm0, %v1818_v0  ;;  %663 = vst.msk [vmem:[%s1820_s19 + $0x1198] sm:$0xff] %vm99_vm0, %v1818_v0 }
 0x12d   : > { %664 = vst.msk [vmem:[%s1820_s19 + $0x11a0] sm:$0xff] %vm99_vm0, %v1818_v0  ;;  %665 = vst.msk [vmem:[%s1820_s19 + $0x11a8] sm:$0xff] %vm99_vm0, %v1818_v0 }
 0x12e   : > { %666 = vst.msk [vmem:[%s1820_s19 + $0x11b0] sm:$0xff] %vm99_vm0, %v1818_v0  ;;  %667 = vst.msk [vmem:[%s1820_s19 + $0x11b8] sm:$0xff] %vm99_vm0, %v1818_v0 }
 0x12f   : > { %668 = vst.msk [vmem:[%s1820_s19 + $0x11c0] sm:$0xff] %vm99_vm0, %v1818_v0  ;;  %669 = vst.msk [vmem:[%s1820_s19 + $0x11c8] sm:$0xff] %vm99_vm0, %v1818_v0 }
 0x130   : > { %670 = vst.msk [vmem:[%s1820_s19 + $0x11d0] sm:$0xff] %vm99_vm0, %v1818_v0  ;;  %671 = vst.msk [vmem:[%s1820_s19 + $0x11d8] sm:$0xff] %vm99_vm0, %v1818_v0 }
 0x131   : > { %672 = vst.msk [vmem:[%s1820_s19 + $0x11e0] sm:$0xff] %vm99_vm0, %v1818_v0  ;;  %673 = vst.msk [vmem:[%s1820_s19 + $0x11e8] sm:$0xff] %vm99_vm0, %v1818_v0 }
 0x132   : > { %674 = vst.msk [vmem:[%s1820_s19 + $0x11f0] sm:$0xff] %vm99_vm0, %v1818_v0  ;;  %675 = vst.msk [vmem:[%s1820_s19 + $0x11f8] sm:$0xff] %vm99_vm0, %v1818_v0 }
 0x133   : > { %676 = vst.msk [vmem:[%s1820_s19 + $0x1200] sm:$0xff] %vm99_vm0, %v1818_v0  ;;  %677 = vst.msk [vmem:[%s1820_s19 + $0x1208] sm:$0xff] %vm99_vm0, %v1818_v0 }
 0x134   : > { %678 = vst.msk [vmem:[%s1820_s19 + $0x1210] sm:$0xff] %vm99_vm0, %v1818_v0  ;;  %679 = vst.msk [vmem:[%s1820_s19 + $0x1218] sm:$0xff] %vm99_vm0, %v1818_v0 }
 0x135   : > { %680 = vst.msk [vmem:[%s1820_s19 + $0x1220] sm:$0xff] %vm99_vm0, %v1818_v0  ;;  %681 = vst.msk [vmem:[%s1820_s19 + $0x1228] sm:$0xff] %vm99_vm0, %v1818_v0 }
 0x136   : > { %682 = vst.msk [vmem:[%s1820_s19 + $0x1230] sm:$0xff] %vm99_vm0, %v1818_v0  ;;  %683 = vst.msk [vmem:[%s1820_s19 + $0x1238] sm:$0xff] %vm99_vm0, %v1818_v0 }
 0x137   : > { %684 = vst.msk [vmem:[%s1820_s19 + $0x1240] sm:$0xff] %vm99_vm0, %v1818_v0  ;;  %685 = vst.msk [vmem:[%s1820_s19 + $0x1248] sm:$0xff] %vm99_vm0, %v1818_v0 }
 0x138   : > { %686 = vst.msk [vmem:[%s1820_s19 + $0x1250] sm:$0xff] %vm99_vm0, %v1818_v0  ;;  %687 = vst.msk [vmem:[%s1820_s19 + $0x1258] sm:$0xff] %vm99_vm0, %v1818_v0 }
 0x139   : > { %688 = vst.msk [vmem:[%s1820_s19 + $0x1260] sm:$0xff] %vm99_vm0, %v1818_v0  ;;  %689 = vst.msk [vmem:[%s1820_s19 + $0x1268] sm:$0xff] %vm99_vm0, %v1818_v0 }
 0x13a   : > { %690 = vst.msk [vmem:[%s1820_s19 + $0x1270] sm:$0xff] %vm99_vm0, %v1818_v0  ;;  %691 = vst.msk [vmem:[%s1820_s19 + $0x1278] sm:$0xff] %vm99_vm0, %v1818_v0 }
 0x13b   : > { %692 = vst.msk [vmem:[%s1820_s19 + $0x1280] sm:$0xff] %vm99_vm0, %v1818_v0  ;;  %693 = vst.msk [vmem:[%s1820_s19 + $0x1288] sm:$0xff] %vm99_vm0, %v1818_v0 }
 0x13c   : > { %694 = vst.msk [vmem:[%s1820_s19 + $0x1290] sm:$0xff] %vm99_vm0, %v1818_v0  ;;  %695 = vst.msk [vmem:[%s1820_s19 + $0x1298] sm:$0xff] %vm99_vm0, %v1818_v0 }
 0x13d   : > { %696 = vst.msk [vmem:[%s1820_s19 + $0x12a0] sm:$0xff] %vm99_vm0, %v1818_v0  ;;  %697 = vst.msk [vmem:[%s1820_s19 + $0x12a8] sm:$0xff] %vm99_vm0, %v1818_v0 }
 0x13e   : > { %698 = vst.msk [vmem:[%s1820_s19 + $0x12b0] sm:$0xff] %vm99_vm0, %v1818_v0  ;;  %699 = vst.msk [vmem:[%s1820_s19 + $0x12b8] sm:$0xff] %vm99_vm0, %v1818_v0 }
 0x13f   : > { %700 = vst.msk [vmem:[%s1820_s19 + $0x12c0] sm:$0xff] %vm99_vm0, %v1818_v0  ;;  %701 = vst.msk [vmem:[%s1820_s19 + $0x12c8] sm:$0xff] %vm99_vm0, %v1818_v0 }
 0x140   : > { %702 = vst.msk [vmem:[%s1820_s19 + $0x12d0] sm:$0xff] %vm99_vm0, %v1818_v0  ;;  %703 = vst.msk [vmem:[%s1820_s19 + $0x12d8] sm:$0xff] %vm99_vm0, %v1818_v0 }
 0x141   : > { %704 = vst.msk [vmem:[%s1820_s19 + $0x12e0] sm:$0xff] %vm99_vm0, %v1818_v0  ;;  %705 = vst.msk [vmem:[%s1820_s19 + $0x12e8] sm:$0xff] %vm99_vm0, %v1818_v0 }
 0x142   : > { %706 = vst.msk [vmem:[%s1820_s19 + $0x12f0] sm:$0xff] %vm99_vm0, %v1818_v0  ;;  %707 = vst.msk [vmem:[%s1820_s19 + $0x12f8] sm:$0xff] %vm99_vm0, %v1818_v0 }
 0x143   : > { %708 = vst.msk [vmem:[%s1820_s19 + $0x1300] sm:$0xff] %vm99_vm0, %v1818_v0  ;;  %709 = vst.msk [vmem:[%s1820_s19 + $0x1308] sm:$0xff] %vm99_vm0, %v1818_v0 }
 0x144   : > { %710 = vst.msk [vmem:[%s1820_s19 + $0x1310] sm:$0xff] %vm99_vm0, %v1818_v0  ;;  %711 = vst.msk [vmem:[%s1820_s19 + $0x1318] sm:$0xff] %vm99_vm0, %v1818_v0 }
 0x145   : > { %712 = vst.msk [vmem:[%s1820_s19 + $0x1320] sm:$0xff] %vm99_vm0, %v1818_v0  ;;  %713 = vst.msk [vmem:[%s1820_s19 + $0x1328] sm:$0xff] %vm99_vm0, %v1818_v0 }
 0x146   : > { %714 = vst.msk [vmem:[%s1820_s19 + $0x1330] sm:$0xff] %vm99_vm0, %v1818_v0  ;;  %715 = vst.msk [vmem:[%s1820_s19 + $0x1338] sm:$0xff] %vm99_vm0, %v1818_v0 }
 0x147   : > { %716 = vst.msk [vmem:[%s1820_s19 + $0x1340] sm:$0xff] %vm99_vm0, %v1818_v0  ;;  %717 = vst.msk [vmem:[%s1820_s19 + $0x1348] sm:$0xff] %vm99_vm0, %v1818_v0 }
 0x148   : > { %718 = vst.msk [vmem:[%s1820_s19 + $0x1350] sm:$0xff] %vm99_vm0, %v1818_v0  ;;  %719 = vst.msk [vmem:[%s1820_s19 + $0x1358] sm:$0xff] %vm99_vm0, %v1818_v0 }
 0x149   : > { %720 = vst.msk [vmem:[%s1820_s19 + $0x1360] sm:$0xff] %vm99_vm0, %v1818_v0  ;;  %721 = vst.msk [vmem:[%s1820_s19 + $0x1368] sm:$0xff] %vm99_vm0, %v1818_v0 }
 0x14a   : > { %722 = vst.msk [vmem:[%s1820_s19 + $0x1370] sm:$0xff] %vm99_vm0, %v1818_v0  ;;  %723 = vst.msk [vmem:[%s1820_s19 + $0x1378] sm:$0xff] %vm99_vm0, %v1818_v0 }
 0x14b   : > { %724 = vst.msk [vmem:[%s1820_s19 + $0x1380] sm:$0xff] %vm99_vm0, %v1818_v0  ;;  %725 = vst.msk [vmem:[%s1820_s19 + $0x1388] sm:$0xff] %vm99_vm0, %v1818_v0 }
 0x14c   : > { %726 = vst.msk [vmem:[%s1820_s19 + $0x1390] sm:$0xff] %vm99_vm0, %v1818_v0  ;;  %727 = vst.msk [vmem:[%s1820_s19 + $0x1398] sm:$0xff] %vm99_vm0, %v1818_v0 }
 0x14d   : > { %728 = vst.msk [vmem:[%s1820_s19 + $0x13a0] sm:$0xff] %vm99_vm0, %v1818_v0  ;;  %729 = vst.msk [vmem:[%s1820_s19 + $0x13a8] sm:$0xff] %vm99_vm0, %v1818_v0 }
 0x14e   : > { %730 = vst.msk [vmem:[%s1820_s19 + $0x13b0] sm:$0xff] %vm99_vm0, %v1818_v0  ;;  %731 = vst.msk [vmem:[%s1820_s19 + $0x13b8] sm:$0xff] %vm99_vm0, %v1818_v0 }
 0x14f   : > { %732 = vst.msk [vmem:[%s1820_s19 + $0x13c0] sm:$0xff] %vm99_vm0, %v1818_v0  ;;  %733 = vst.msk [vmem:[%s1820_s19 + $0x13c8] sm:$0xff] %vm99_vm0, %v1818_v0 }
 0x150   : > { %734 = vst.msk [vmem:[%s1820_s19 + $0x13d0] sm:$0xff] %vm99_vm0, %v1818_v0  ;;  %735 = vst.msk [vmem:[%s1820_s19 + $0x13d8] sm:$0xff] %vm99_vm0, %v1818_v0 }
 0x151   : > { %736 = vst.msk [vmem:[%s1820_s19 + $0x13e0] sm:$0xff] %vm99_vm0, %v1818_v0  ;;  %737 = vst.msk [vmem:[%s1820_s19 + $0x13e8] sm:$0xff] %vm99_vm0, %v1818_v0 }
 0x152   : > { %738 = vst.msk [vmem:[%s1820_s19 + $0x13f0] sm:$0xff] %vm99_vm0, %v1818_v0  ;;  %739 = vst.msk [vmem:[%s1820_s19 + $0x13f8] sm:$0xff] %vm99_vm0, %v1818_v0 }
 0x153   : > { %740 = vst.msk [vmem:[%s1820_s19 + $0x1400] sm:$0xff] %vm99_vm0, %v1818_v0  ;;  %741 = vst.msk [vmem:[%s1820_s19 + $0x1408] sm:$0xff] %vm99_vm0, %v1818_v0 }
 0x154   : > { %742 = vst.msk [vmem:[%s1820_s19 + $0x1410] sm:$0xff] %vm99_vm0, %v1818_v0  ;;  %743 = vst.msk [vmem:[%s1820_s19 + $0x1418] sm:$0xff] %vm99_vm0, %v1818_v0 }
 0x155   : > { %744 = vst.msk [vmem:[%s1820_s19 + $0x1420] sm:$0xff] %vm99_vm0, %v1818_v0  ;;  %745 = vst.msk [vmem:[%s1820_s19 + $0x1428] sm:$0xff] %vm99_vm0, %v1818_v0 }
 0x156   : > { %746 = vst.msk [vmem:[%s1820_s19 + $0x1430] sm:$0xff] %vm99_vm0, %v1818_v0  ;;  %747 = vst.msk [vmem:[%s1820_s19 + $0x1438] sm:$0xff] %vm99_vm0, %v1818_v0 }
 0x157   : > { %748 = vst.msk [vmem:[%s1820_s19 + $0x1440] sm:$0xff] %vm99_vm0, %v1818_v0  ;;  %749 = vst.msk [vmem:[%s1820_s19 + $0x1448] sm:$0xff] %vm99_vm0, %v1818_v0 }
 0x158   : > { %750 = vst.msk [vmem:[%s1820_s19 + $0x1450] sm:$0xff] %vm99_vm0, %v1818_v0  ;;  %751 = vst.msk [vmem:[%s1820_s19 + $0x1458] sm:$0xff] %vm99_vm0, %v1818_v0 }
 0x159   : > { %752 = vst.msk [vmem:[%s1820_s19 + $0x1460] sm:$0xff] %vm99_vm0, %v1818_v0  ;;  %753 = vst.msk [vmem:[%s1820_s19 + $0x1468] sm:$0xff] %vm99_vm0, %v1818_v0 }
 0x15a   : > { %754 = vst.msk [vmem:[%s1820_s19 + $0x1470] sm:$0xff] %vm99_vm0, %v1818_v0  ;;  %755 = vst.msk [vmem:[%s1820_s19 + $0x1478] sm:$0xff] %vm99_vm0, %v1818_v0 }
 0x15b   : > { %756 = vst.msk [vmem:[%s1820_s19 + $0x1480] sm:$0xff] %vm99_vm0, %v1818_v0  ;;  %757 = vst.msk [vmem:[%s1820_s19 + $0x1488] sm:$0xff] %vm99_vm0, %v1818_v0 }
 0x15c   : > { %758 = vst.msk [vmem:[%s1820_s19 + $0x1490] sm:$0xff] %vm99_vm0, %v1818_v0  ;;  %759 = vst.msk [vmem:[%s1820_s19 + $0x1498] sm:$0xff] %vm99_vm0, %v1818_v0 }
 0x15d   : > { %760 = vst.msk [vmem:[%s1820_s19 + $0x14a0] sm:$0xff] %vm99_vm0, %v1818_v0  ;;  %761 = vst.msk [vmem:[%s1820_s19 + $0x14a8] sm:$0xff] %vm99_vm0, %v1818_v0 }
 0x15e   : > { %762 = vst.msk [vmem:[%s1820_s19 + $0x14b0] sm:$0xff] %vm99_vm0, %v1818_v0  ;;  %763 = vst.msk [vmem:[%s1820_s19 + $0x14b8] sm:$0xff] %vm99_vm0, %v1818_v0 }
 0x15f   : > { %764 = vst.msk [vmem:[%s1820_s19 + $0x14c0] sm:$0xff] %vm99_vm0, %v1818_v0  ;;  %765 = vst.msk [vmem:[%s1820_s19 + $0x14c8] sm:$0xff] %vm99_vm0, %v1818_v0 }
 0x160   : > { %766 = vst.msk [vmem:[%s1820_s19 + $0x14d0] sm:$0xff] %vm99_vm0, %v1818_v0  ;;  %767 = vst.msk [vmem:[%s1820_s19 + $0x14d8] sm:$0xff] %vm99_vm0, %v1818_v0 }
 0x161   : > { %768 = vst.msk [vmem:[%s1820_s19 + $0x14e0] sm:$0xff] %vm99_vm0, %v1818_v0  ;;  %769 = vst.msk [vmem:[%s1820_s19 + $0x14e8] sm:$0xff] %vm99_vm0, %v1818_v0 }
 0x162   : > { %770 = vst.msk [vmem:[%s1820_s19 + $0x14f0] sm:$0xff] %vm99_vm0, %v1818_v0  ;;  %771 = vst.msk [vmem:[%s1820_s19 + $0x14f8] sm:$0xff] %vm99_vm0, %v1818_v0 }
 0x163   : > { %772 = vst.msk [vmem:[%s1820_s19 + $0x1500] sm:$0xff] %vm99_vm0, %v1818_v0  ;;  %773 = vst.msk [vmem:[%s1820_s19 + $0x1508] sm:$0xff] %vm99_vm0, %v1818_v0 }
 0x164   : > { %774 = vst.msk [vmem:[%s1820_s19 + $0x1510] sm:$0xff] %vm99_vm0, %v1818_v0  ;;  %775 = vst.msk [vmem:[%s1820_s19 + $0x1518] sm:$0xff] %vm99_vm0, %v1818_v0 }
 0x165   : > { %776 = vst.msk [vmem:[%s1820_s19 + $0x1520] sm:$0xff] %vm99_vm0, %v1818_v0  ;;  %777 = vst.msk [vmem:[%s1820_s19 + $0x1528] sm:$0xff] %vm99_vm0, %v1818_v0 }
 0x166   : > { %778 = vst.msk [vmem:[%s1820_s19 + $0x1530] sm:$0xff] %vm99_vm0, %v1818_v0  ;;  %779 = vst.msk [vmem:[%s1820_s19 + $0x1538] sm:$0xff] %vm99_vm0, %v1818_v0 }
 0x167   : > { %780 = vst.msk [vmem:[%s1820_s19 + $0x1540] sm:$0xff] %vm99_vm0, %v1818_v0  ;;  %781 = vst.msk [vmem:[%s1820_s19 + $0x1548] sm:$0xff] %vm99_vm0, %v1818_v0 }
 0x168   : > { %782 = vst.msk [vmem:[%s1820_s19 + $0x1550] sm:$0xff] %vm99_vm0, %v1818_v0  ;;  %783 = vst.msk [vmem:[%s1820_s19 + $0x1558] sm:$0xff] %vm99_vm0, %v1818_v0 }
 0x169   : > { %784 = vst.msk [vmem:[%s1820_s19 + $0x1560] sm:$0xff] %vm99_vm0, %v1818_v0  ;;  %785 = vst.msk [vmem:[%s1820_s19 + $0x1568] sm:$0xff] %vm99_vm0, %v1818_v0 }
 0x16a   : > { %786 = vst.msk [vmem:[%s1820_s19 + $0x1570] sm:$0xff] %vm99_vm0, %v1818_v0  ;;  %787 = vst.msk [vmem:[%s1820_s19 + $0x1578] sm:$0xff] %vm99_vm0, %v1818_v0 }
 0x16b   : > { %788 = vst.msk [vmem:[%s1820_s19 + $0x1580] sm:$0xff] %vm99_vm0, %v1818_v0  ;;  %789 = vst.msk [vmem:[%s1820_s19 + $0x1588] sm:$0xff] %vm99_vm0, %v1818_v0 }
 0x16c   : > { %790 = vst.msk [vmem:[%s1820_s19 + $0x1590] sm:$0xff] %vm99_vm0, %v1818_v0  ;;  %791 = vst.msk [vmem:[%s1820_s19 + $0x1598] sm:$0xff] %vm99_vm0, %v1818_v0 }
 0x16d   : > { %792 = vst.msk [vmem:[%s1820_s19 + $0x15a0] sm:$0xff] %vm99_vm0, %v1818_v0  ;;  %793 = vst.msk [vmem:[%s1820_s19 + $0x15a8] sm:$0xff] %vm99_vm0, %v1818_v0 }
 0x16e   : > { %794 = vst.msk [vmem:[%s1820_s19 + $0x15b0] sm:$0xff] %vm99_vm0, %v1818_v0  ;;  %795 = vst.msk [vmem:[%s1820_s19 + $0x15b8] sm:$0xff] %vm99_vm0, %v1818_v0 }
 0x16f   : > { %796 = vst.msk [vmem:[%s1820_s19 + $0x15c0] sm:$0xff] %vm99_vm0, %v1818_v0  ;;  %797 = vst.msk [vmem:[%s1820_s19 + $0x15c8] sm:$0xff] %vm99_vm0, %v1818_v0 }
 0x170   : > { %798 = vst.msk [vmem:[%s1820_s19 + $0x15d0] sm:$0xff] %vm99_vm0, %v1818_v0  ;;  %799 = vst.msk [vmem:[%s1820_s19 + $0x15d8] sm:$0xff] %vm99_vm0, %v1818_v0 }
 0x171   : > { %800 = vst.msk [vmem:[%s1820_s19 + $0x15e0] sm:$0xff] %vm99_vm0, %v1818_v0  ;;  %801 = vst.msk [vmem:[%s1820_s19 + $0x15e8] sm:$0xff] %vm99_vm0, %v1818_v0 }
 0x172   : > { %802 = vst.msk [vmem:[%s1820_s19 + $0x15f0] sm:$0xff] %vm99_vm0, %v1818_v0  ;;  %803 = vst.msk [vmem:[%s1820_s19 + $0x15f8] sm:$0xff] %vm99_vm0, %v1818_v0 }
 0x173   : > { %804 = vst.msk [vmem:[%s1820_s19 + $0x1600] sm:$0xff] %vm99_vm0, %v1818_v0  ;;  %805 = vst.msk [vmem:[%s1820_s19 + $0x1608] sm:$0xff] %vm99_vm0, %v1818_v0 }
 0x174   : > { %806 = vst.msk [vmem:[%s1820_s19 + $0x1610] sm:$0xff] %vm99_vm0, %v1818_v0  ;;  %807 = vst.msk [vmem:[%s1820_s19 + $0x1618] sm:$0xff] %vm99_vm0, %v1818_v0 }
 0x175   : > { %808 = vst.msk [vmem:[%s1820_s19 + $0x1620] sm:$0xff] %vm99_vm0, %v1818_v0  ;;  %809 = vst.msk [vmem:[%s1820_s19 + $0x1628] sm:$0xff] %vm99_vm0, %v1818_v0 }
 0x176   : > { %810 = vst.msk [vmem:[%s1820_s19 + $0x1630] sm:$0xff] %vm99_vm0, %v1818_v0  ;;  %811 = vst.msk [vmem:[%s1820_s19 + $0x1638] sm:$0xff] %vm99_vm0, %v1818_v0 }
 0x177   : > { %812 = vst.msk [vmem:[%s1820_s19 + $0x1640] sm:$0xff] %vm99_vm0, %v1818_v0  ;;  %813 = vst.msk [vmem:[%s1820_s19 + $0x1648] sm:$0xff] %vm99_vm0, %v1818_v0 }
 0x178   : > { %814 = vst.msk [vmem:[%s1820_s19 + $0x1650] sm:$0xff] %vm99_vm0, %v1818_v0  ;;  %815 = vst.msk [vmem:[%s1820_s19 + $0x1658] sm:$0xff] %vm99_vm0, %v1818_v0 }
 0x179   : > { %816 = vst.msk [vmem:[%s1820_s19 + $0x1660] sm:$0xff] %vm99_vm0, %v1818_v0  ;;  %817 = vst.msk [vmem:[%s1820_s19 + $0x1668] sm:$0xff] %vm99_vm0, %v1818_v0 }
 0x17a   : > { %818 = vst.msk [vmem:[%s1820_s19 + $0x1670] sm:$0xff] %vm99_vm0, %v1818_v0  ;;  %819 = vst.msk [vmem:[%s1820_s19 + $0x1678] sm:$0xff] %vm99_vm0, %v1818_v0 }
 0x17b   : > { %820 = vst.msk [vmem:[%s1820_s19 + $0x1680] sm:$0xff] %vm99_vm0, %v1818_v0  ;;  %821 = vst.msk [vmem:[%s1820_s19 + $0x1688] sm:$0xff] %vm99_vm0, %v1818_v0 }
 0x17c   : > { %822 = vst.msk [vmem:[%s1820_s19 + $0x1690] sm:$0xff] %vm99_vm0, %v1818_v0  ;;  %823 = vst.msk [vmem:[%s1820_s19 + $0x1698] sm:$0xff] %vm99_vm0, %v1818_v0 }
 0x17d   : > { %824 = vst.msk [vmem:[%s1820_s19 + $0x16a0] sm:$0xff] %vm99_vm0, %v1818_v0  ;;  %825 = vst.msk [vmem:[%s1820_s19 + $0x16a8] sm:$0xff] %vm99_vm0, %v1818_v0 }
 0x17e   : > { %826 = vst.msk [vmem:[%s1820_s19 + $0x16b0] sm:$0xff] %vm99_vm0, %v1818_v0  ;;  %827 = vst.msk [vmem:[%s1820_s19 + $0x16b8] sm:$0xff] %vm99_vm0, %v1818_v0 }
 0x17f   : > { %828 = vst.msk [vmem:[%s1820_s19 + $0x16c0] sm:$0xff] %vm99_vm0, %v1818_v0  ;;  %829 = vst.msk [vmem:[%s1820_s19 + $0x16c8] sm:$0xff] %vm99_vm0, %v1818_v0 }
 0x180   : > { %830 = vst.msk [vmem:[%s1820_s19 + $0x16d0] sm:$0xff] %vm99_vm0, %v1818_v0  ;;  %831 = vst.msk [vmem:[%s1820_s19 + $0x16d8] sm:$0xff] %vm99_vm0, %v1818_v0 }
 0x181   : > { %832 = vst.msk [vmem:[%s1820_s19 + $0x16e0] sm:$0xff] %vm99_vm0, %v1818_v0  ;;  %833 = vst.msk [vmem:[%s1820_s19 + $0x16e8] sm:$0xff] %vm99_vm0, %v1818_v0 }
 0x182   : > { %834 = vst.msk [vmem:[%s1820_s19 + $0x16f0] sm:$0xff] %vm99_vm0, %v1818_v0  ;;  %835 = vst.msk [vmem:[%s1820_s19 + $0x16f8] sm:$0xff] %vm99_vm0, %v1818_v0 }
 0x183   : > { %836 = vst.msk [vmem:[%s1820_s19 + $0x1700] sm:$0xff] %vm99_vm0, %v1818_v0  ;;  %837 = vst.msk [vmem:[%s1820_s19 + $0x1708] sm:$0xff] %vm99_vm0, %v1818_v0 }
 0x184   : > { %838 = vst.msk [vmem:[%s1820_s19 + $0x1710] sm:$0xff] %vm99_vm0, %v1818_v0  ;;  %839 = vst.msk [vmem:[%s1820_s19 + $0x1718] sm:$0xff] %vm99_vm0, %v1818_v0 }
 0x185   : > { %840 = vst.msk [vmem:[%s1820_s19 + $0x1720] sm:$0xff] %vm99_vm0, %v1818_v0  ;;  %841 = vst.msk [vmem:[%s1820_s19 + $0x1728] sm:$0xff] %vm99_vm0, %v1818_v0 }
 0x186   : > { %842 = vst.msk [vmem:[%s1820_s19 + $0x1730] sm:$0xff] %vm99_vm0, %v1818_v0  ;;  %843 = vst.msk [vmem:[%s1820_s19 + $0x1738] sm:$0xff] %vm99_vm0, %v1818_v0 }
 0x187   : > { %844 = vst.msk [vmem:[%s1820_s19 + $0x1740] sm:$0xff] %vm99_vm0, %v1818_v0  ;;  %845 = vst.msk [vmem:[%s1820_s19 + $0x1748] sm:$0xff] %vm99_vm0, %v1818_v0 }
 0x188   : > { %846 = vst.msk [vmem:[%s1820_s19 + $0x1750] sm:$0xff] %vm99_vm0, %v1818_v0  ;;  %847 = vst.msk [vmem:[%s1820_s19 + $0x1758] sm:$0xff] %vm99_vm0, %v1818_v0 }
 0x189   : > { %848 = vst.msk [vmem:[%s1820_s19 + $0x1760] sm:$0xff] %vm99_vm0, %v1818_v0  ;;  %849 = vst.msk [vmem:[%s1820_s19 + $0x1768] sm:$0xff] %vm99_vm0, %v1818_v0 }
 0x18a   : > { %850 = vst.msk [vmem:[%s1820_s19 + $0x1770] sm:$0xff] %vm99_vm0, %v1818_v0  ;;  %851 = vst.msk [vmem:[%s1820_s19 + $0x1778] sm:$0xff] %vm99_vm0, %v1818_v0 }
 0x18b   : > { %852 = vst.msk [vmem:[%s1820_s19 + $0x1780] sm:$0xff] %vm99_vm0, %v1818_v0  ;;  %853 = vst.msk [vmem:[%s1820_s19 + $0x1788] sm:$0xff] %vm99_vm0, %v1818_v0 }
 0x18c   : > { %854 = vst.msk [vmem:[%s1820_s19 + $0x1790] sm:$0xff] %vm99_vm0, %v1818_v0  ;;  %855 = vst.msk [vmem:[%s1820_s19 + $0x1798] sm:$0xff] %vm99_vm0, %v1818_v0 }
 0x18d   : > { %856 = vst.msk [vmem:[%s1820_s19 + $0x17a0] sm:$0xff] %vm99_vm0, %v1818_v0  ;;  %857 = vst.msk [vmem:[%s1820_s19 + $0x17a8] sm:$0xff] %vm99_vm0, %v1818_v0 }
 0x18e   : > { %858 = vst.msk [vmem:[%s1820_s19 + $0x17b0] sm:$0xff] %vm99_vm0, %v1818_v0  ;;  %859 = vst.msk [vmem:[%s1820_s19 + $0x17b8] sm:$0xff] %vm99_vm0, %v1818_v0 }
 0x18f   : > { %860 = vst.msk [vmem:[%s1820_s19 + $0x17c0] sm:$0xff] %vm99_vm0, %v1818_v0  ;;  %861 = vst.msk [vmem:[%s1820_s19 + $0x17c8] sm:$0xff] %vm99_vm0, %v1818_v0 }
 0x190   : > { %862 = vst.msk [vmem:[%s1820_s19 + $0x17d0] sm:$0xff] %vm99_vm0, %v1818_v0  ;;  %863 = vst.msk [vmem:[%s1820_s19 + $0x17d8] sm:$0xff] %vm99_vm0, %v1818_v0 }
 0x191   : > { %864 = vst.msk [vmem:[%s1820_s19 + $0x17e0] sm:$0xff] %vm99_vm0, %v1818_v0  ;;  %865 = vst.msk [vmem:[%s1820_s19 + $0x17e8] sm:$0xff] %vm99_vm0, %v1818_v0 }
 0x192   : > { %866 = vst.msk [vmem:[%s1820_s19 + $0x17f0] sm:$0xff] %vm99_vm0, %v1818_v0  ;;  %867 = vst.msk [vmem:[%s1820_s19 + $0x17f8] sm:$0xff] %vm99_vm0, %v1818_v0 }
 0x193   : > { %868 = vst.msk [vmem:[%s1820_s19 + $0x1800] sm:$0xff] %vm99_vm0, %v1818_v0  ;;  %869 = vst.msk [vmem:[%s1820_s19 + $0x1808] sm:$0xff] %vm99_vm0, %v1818_v0 }
 0x194   : > { %870 = vst.msk [vmem:[%s1820_s19 + $0x1810] sm:$0xff] %vm99_vm0, %v1818_v0  ;;  %871 = vst.msk [vmem:[%s1820_s19 + $0x1818] sm:$0xff] %vm99_vm0, %v1818_v0 }
 0x195   : > { %872 = vst.msk [vmem:[%s1820_s19 + $0x1820] sm:$0xff] %vm99_vm0, %v1818_v0  ;;  %873 = vst.msk [vmem:[%s1820_s19 + $0x1828] sm:$0xff] %vm99_vm0, %v1818_v0 }
 0x196   : > { %874 = vst.msk [vmem:[%s1820_s19 + $0x1830] sm:$0xff] %vm99_vm0, %v1818_v0  ;;  %875 = vst.msk [vmem:[%s1820_s19 + $0x1838] sm:$0xff] %vm99_vm0, %v1818_v0 }
 0x197   : > { %876 = vst.msk [vmem:[%s1820_s19 + $0x1840] sm:$0xff] %vm99_vm0, %v1818_v0  ;;  %877 = vst.msk [vmem:[%s1820_s19 + $0x1848] sm:$0xff] %vm99_vm0, %v1818_v0 }
 0x198   : > { %878 = vst.msk [vmem:[%s1820_s19 + $0x1850] sm:$0xff] %vm99_vm0, %v1818_v0  ;;  %879 = vst.msk [vmem:[%s1820_s19 + $0x1858] sm:$0xff] %vm99_vm0, %v1818_v0 }
 0x199   : > { %880 = vst.msk [vmem:[%s1820_s19 + $0x1860] sm:$0xff] %vm99_vm0, %v1818_v0  ;;  %881 = vst.msk [vmem:[%s1820_s19 + $0x1868] sm:$0xff] %vm99_vm0, %v1818_v0 }
 0x19a   : > { %882 = vst.msk [vmem:[%s1820_s19 + $0x1870] sm:$0xff] %vm99_vm0, %v1818_v0  ;;  %883 = vst.msk [vmem:[%s1820_s19 + $0x1878] sm:$0xff] %vm99_vm0, %v1818_v0 }
 0x19b   : > { %884 = vst.msk [vmem:[%s1820_s19 + $0x1880] sm:$0xff] %vm99_vm0, %v1818_v0  ;;  %885 = vst.msk [vmem:[%s1820_s19 + $0x1888] sm:$0xff] %vm99_vm0, %v1818_v0 }
 0x19c   : > { %886 = vst.msk [vmem:[%s1820_s19 + $0x1890] sm:$0xff] %vm99_vm0, %v1818_v0  ;;  %887 = vst.msk [vmem:[%s1820_s19 + $0x1898] sm:$0xff] %vm99_vm0, %v1818_v0 }
 0x19d   : > { %888 = vst.msk [vmem:[%s1820_s19 + $0x18a0] sm:$0xff] %vm99_vm0, %v1818_v0  ;;  %889 = vst.msk [vmem:[%s1820_s19 + $0x18a8] sm:$0xff] %vm99_vm0, %v1818_v0 }
 0x19e   : > { %890 = vst.msk [vmem:[%s1820_s19 + $0x18b0] sm:$0xff] %vm99_vm0, %v1818_v0  ;;  %891 = vst.msk [vmem:[%s1820_s19 + $0x18b8] sm:$0xff] %vm99_vm0, %v1818_v0 }
 0x19f   : > { %892 = vst.msk [vmem:[%s1820_s19 + $0x18c0] sm:$0xff] %vm99_vm0, %v1818_v0  ;;  %893 = vst.msk [vmem:[%s1820_s19 + $0x18c8] sm:$0xff] %vm99_vm0, %v1818_v0 }
 0x1a0   : > { %894 = vst.msk [vmem:[%s1820_s19 + $0x18d0] sm:$0xff] %vm99_vm0, %v1818_v0  ;;  %895 = vst.msk [vmem:[%s1820_s19 + $0x18d8] sm:$0xff] %vm99_vm0, %v1818_v0 }
 0x1a1   : > { %896 = vst.msk [vmem:[%s1820_s19 + $0x18e0] sm:$0xff] %vm99_vm0, %v1818_v0  ;;  %897 = vst.msk [vmem:[%s1820_s19 + $0x18e8] sm:$0xff] %vm99_vm0, %v1818_v0 }
 0x1a2   : > { %898 = vst.msk [vmem:[%s1820_s19 + $0x18f0] sm:$0xff] %vm99_vm0, %v1818_v0  ;;  %899 = vst.msk [vmem:[%s1820_s19 + $0x18f8] sm:$0xff] %vm99_vm0, %v1818_v0 }
 0x1a3   : > { %900 = vst.msk [vmem:[%s1820_s19 + $0x1900] sm:$0xff] %vm99_vm0, %v1818_v0  ;;  %901 = vst.msk [vmem:[%s1820_s19 + $0x1908] sm:$0xff] %vm99_vm0, %v1818_v0 }
 0x1a4   : > { %902 = vst.msk [vmem:[%s1820_s19 + $0x1910] sm:$0xff] %vm99_vm0, %v1818_v0  ;;  %903 = vst.msk [vmem:[%s1820_s19 + $0x1918] sm:$0xff] %vm99_vm0, %v1818_v0 }
 0x1a5   : > { %904 = vst.msk [vmem:[%s1820_s19 + $0x1920] sm:$0xff] %vm99_vm0, %v1818_v0  ;;  %905 = vst.msk [vmem:[%s1820_s19 + $0x1928] sm:$0xff] %vm99_vm0, %v1818_v0 }
 0x1a6   : > { %906 = vst.msk [vmem:[%s1820_s19 + $0x1930] sm:$0xff] %vm99_vm0, %v1818_v0  ;;  %907 = vst.msk [vmem:[%s1820_s19 + $0x1938] sm:$0xff] %vm99_vm0, %v1818_v0 }
 0x1a7   : > { %908 = vst.msk [vmem:[%s1820_s19 + $0x1940] sm:$0xff] %vm99_vm0, %v1818_v0  ;;  %909 = vst.msk [vmem:[%s1820_s19 + $0x1948] sm:$0xff] %vm99_vm0, %v1818_v0 }
 0x1a8   : > { %910 = vst.msk [vmem:[%s1820_s19 + $0x1950] sm:$0xff] %vm99_vm0, %v1818_v0  ;;  %911 = vst.msk [vmem:[%s1820_s19 + $0x1958] sm:$0xff] %vm99_vm0, %v1818_v0 }
 0x1a9   : > { %912 = vst.msk [vmem:[%s1820_s19 + $0x1960] sm:$0xff] %vm99_vm0, %v1818_v0  ;;  %913 = vst.msk [vmem:[%s1820_s19 + $0x1968] sm:$0xff] %vm99_vm0, %v1818_v0 }
 0x1aa   : > { %914 = vst.msk [vmem:[%s1820_s19 + $0x1970] sm:$0xff] %vm99_vm0, %v1818_v0  ;;  %915 = vst.msk [vmem:[%s1820_s19 + $0x1978] sm:$0xff] %vm99_vm0, %v1818_v0 }
 0x1ab   : > { %916 = vst.msk [vmem:[%s1820_s19 + $0x1980] sm:$0xff] %vm99_vm0, %v1818_v0  ;;  %917 = vst.msk [vmem:[%s1820_s19 + $0x1988] sm:$0xff] %vm99_vm0, %v1818_v0 }
 0x1ac   : > { %918 = vst.msk [vmem:[%s1820_s19 + $0x1990] sm:$0xff] %vm99_vm0, %v1818_v0  ;;  %919 = vst.msk [vmem:[%s1820_s19 + $0x1998] sm:$0xff] %vm99_vm0, %v1818_v0 }
 0x1ad   : > { %920 = vst.msk [vmem:[%s1820_s19 + $0x19a0] sm:$0xff] %vm99_vm0, %v1818_v0  ;;  %921 = vst.msk [vmem:[%s1820_s19 + $0x19a8] sm:$0xff] %vm99_vm0, %v1818_v0 }
 0x1ae   : > { %922 = vst.msk [vmem:[%s1820_s19 + $0x19b0] sm:$0xff] %vm99_vm0, %v1818_v0  ;;  %923 = vst.msk [vmem:[%s1820_s19 + $0x19b8] sm:$0xff] %vm99_vm0, %v1818_v0 }
 0x1af   : > { %924 = vst.msk [vmem:[%s1820_s19 + $0x19c0] sm:$0xff] %vm99_vm0, %v1818_v0  ;;  %925 = vst.msk [vmem:[%s1820_s19 + $0x19c8] sm:$0xff] %vm99_vm0, %v1818_v0 }
 0x1b0   : > { %926 = vst.msk [vmem:[%s1820_s19 + $0x19d0] sm:$0xff] %vm99_vm0, %v1818_v0  ;;  %927 = vst.msk [vmem:[%s1820_s19 + $0x19d8] sm:$0xff] %vm99_vm0, %v1818_v0 }
 0x1b1   : > { %928 = vst.msk [vmem:[%s1820_s19 + $0x19e0] sm:$0xff] %vm99_vm0, %v1818_v0  ;;  %929 = vst.msk [vmem:[%s1820_s19 + $0x19e8] sm:$0xff] %vm99_vm0, %v1818_v0 }
 0x1b2   : > { %930 = vst.msk [vmem:[%s1820_s19 + $0x19f0] sm:$0xff] %vm99_vm0, %v1818_v0  ;;  %931 = vst.msk [vmem:[%s1820_s19 + $0x19f8] sm:$0xff] %vm99_vm0, %v1818_v0 }
 0x1b3   : > { %932 = vst.msk [vmem:[%s1820_s19 + $0x1a00] sm:$0xff] %vm99_vm0, %v1818_v0  ;;  %933 = vst.msk [vmem:[%s1820_s19 + $0x1a08] sm:$0xff] %vm99_vm0, %v1818_v0 }
 0x1b4   : > { %934 = vst.msk [vmem:[%s1820_s19 + $0x1a10] sm:$0xff] %vm99_vm0, %v1818_v0  ;;  %935 = vst.msk [vmem:[%s1820_s19 + $0x1a18] sm:$0xff] %vm99_vm0, %v1818_v0 }
 0x1b5   : > { %936 = vst.msk [vmem:[%s1820_s19 + $0x1a20] sm:$0xff] %vm99_vm0, %v1818_v0  ;;  %937 = vst.msk [vmem:[%s1820_s19 + $0x1a28] sm:$0xff] %vm99_vm0, %v1818_v0 }
 0x1b6   : > { %938 = vst.msk [vmem:[%s1820_s19 + $0x1a30] sm:$0xff] %vm99_vm0, %v1818_v0  ;;  %939 = vst.msk [vmem:[%s1820_s19 + $0x1a38] sm:$0xff] %vm99_vm0, %v1818_v0 }
 0x1b7   : > { %940 = vst.msk [vmem:[%s1820_s19 + $0x1a40] sm:$0xff] %vm99_vm0, %v1818_v0  ;;  %941 = vst.msk [vmem:[%s1820_s19 + $0x1a48] sm:$0xff] %vm99_vm0, %v1818_v0 }
 0x1b8   : > { %942 = vst.msk [vmem:[%s1820_s19 + $0x1a50] sm:$0xff] %vm99_vm0, %v1818_v0  ;;  %943 = vst.msk [vmem:[%s1820_s19 + $0x1a58] sm:$0xff] %vm99_vm0, %v1818_v0 }
 0x1b9   : > { %944 = vst.msk [vmem:[%s1820_s19 + $0x1a60] sm:$0xff] %vm99_vm0, %v1818_v0  ;;  %945 = vst.msk [vmem:[%s1820_s19 + $0x1a68] sm:$0xff] %vm99_vm0, %v1818_v0 }
 0x1ba   : > { %946 = vst.msk [vmem:[%s1820_s19 + $0x1a70] sm:$0xff] %vm99_vm0, %v1818_v0  ;;  %947 = vst.msk [vmem:[%s1820_s19 + $0x1a78] sm:$0xff] %vm99_vm0, %v1818_v0 }
 0x1bb   : > { %948 = vst.msk [vmem:[%s1820_s19 + $0x1a80] sm:$0xff] %vm99_vm0, %v1818_v0  ;;  %949 = vst.msk [vmem:[%s1820_s19 + $0x1a88] sm:$0xff] %vm99_vm0, %v1818_v0 }
 0x1bc   : > { %950 = vst.msk [vmem:[%s1820_s19 + $0x1a90] sm:$0xff] %vm99_vm0, %v1818_v0  ;;  %951 = vst.msk [vmem:[%s1820_s19 + $0x1a98] sm:$0xff] %vm99_vm0, %v1818_v0 }
 0x1bd   : > { %952 = vst.msk [vmem:[%s1820_s19 + $0x1aa0] sm:$0xff] %vm99_vm0, %v1818_v0  ;;  %953 = vst.msk [vmem:[%s1820_s19 + $0x1aa8] sm:$0xff] %vm99_vm0, %v1818_v0 }
 0x1be   : > { %954 = vst.msk [vmem:[%s1820_s19 + $0x1ab0] sm:$0xff] %vm99_vm0, %v1818_v0  ;;  %955 = vst.msk [vmem:[%s1820_s19 + $0x1ab8] sm:$0xff] %vm99_vm0, %v1818_v0 }
 0x1bf   : > { %956 = vst.msk [vmem:[%s1820_s19 + $0x1ac0] sm:$0xff] %vm99_vm0, %v1818_v0  ;;  %957 = vst.msk [vmem:[%s1820_s19 + $0x1ac8] sm:$0xff] %vm99_vm0, %v1818_v0 }
 0x1c0   : > { %958 = vst.msk [vmem:[%s1820_s19 + $0x1ad0] sm:$0xff] %vm99_vm0, %v1818_v0  ;;  %959 = vst.msk [vmem:[%s1820_s19 + $0x1ad8] sm:$0xff] %vm99_vm0, %v1818_v0 }
 0x1c1   : > { %960 = vst.msk [vmem:[%s1820_s19 + $0x1ae0] sm:$0xff] %vm99_vm0, %v1818_v0  ;;  %961 = vst.msk [vmem:[%s1820_s19 + $0x1ae8] sm:$0xff] %vm99_vm0, %v1818_v0 }
 0x1c2   : > { %962 = vst.msk [vmem:[%s1820_s19 + $0x1af0] sm:$0xff] %vm99_vm0, %v1818_v0  ;;  %963 = vst.msk [vmem:[%s1820_s19 + $0x1af8] sm:$0xff] %vm99_vm0, %v1818_v0 }
 0x1c3   : > { %964 = vst.msk [vmem:[%s1820_s19 + $0x1b00] sm:$0xff] %vm99_vm0, %v1818_v0  ;;  %965 = vst.msk [vmem:[%s1820_s19 + $0x1b08] sm:$0xff] %vm99_vm0, %v1818_v0 }
 0x1c4   : > { %966 = vst.msk [vmem:[%s1820_s19 + $0x1b10] sm:$0xff] %vm99_vm0, %v1818_v0  ;;  %967 = vst.msk [vmem:[%s1820_s19 + $0x1b18] sm:$0xff] %vm99_vm0, %v1818_v0 }
 0x1c5   : > { %968 = vst.msk [vmem:[%s1820_s19 + $0x1b20] sm:$0xff] %vm99_vm0, %v1818_v0  ;;  %969 = vst.msk [vmem:[%s1820_s19 + $0x1b28] sm:$0xff] %vm99_vm0, %v1818_v0 }
 0x1c6   : > { %970 = vst.msk [vmem:[%s1820_s19 + $0x1b30] sm:$0xff] %vm99_vm0, %v1818_v0  ;;  %971 = vst.msk [vmem:[%s1820_s19 + $0x1b38] sm:$0xff] %vm99_vm0, %v1818_v0 }
 0x1c7   : > { %972 = vst.msk [vmem:[%s1820_s19 + $0x1b40] sm:$0xff] %vm99_vm0, %v1818_v0  ;;  %973 = vst.msk [vmem:[%s1820_s19 + $0x1b48] sm:$0xff] %vm99_vm0, %v1818_v0 }
 0x1c8   : > { %974 = vst.msk [vmem:[%s1820_s19 + $0x1b50] sm:$0xff] %vm99_vm0, %v1818_v0  ;;  %975 = vst.msk [vmem:[%s1820_s19 + $0x1b58] sm:$0xff] %vm99_vm0, %v1818_v0 }
 0x1c9   : > { %976 = vst.msk [vmem:[%s1820_s19 + $0x1b60] sm:$0xff] %vm99_vm0, %v1818_v0  ;;  %977 = vst.msk [vmem:[%s1820_s19 + $0x1b68] sm:$0xff] %vm99_vm0, %v1818_v0 }
 0x1ca   : > { %978 = vst.msk [vmem:[%s1820_s19 + $0x1b70] sm:$0xff] %vm99_vm0, %v1818_v0  ;;  %979 = vst.msk [vmem:[%s1820_s19 + $0x1b78] sm:$0xff] %vm99_vm0, %v1818_v0 }
 0x1cb   : > { %980 = vst.msk [vmem:[%s1820_s19 + $0x1b80] sm:$0xff] %vm99_vm0, %v1818_v0  ;;  %981 = vst.msk [vmem:[%s1820_s19 + $0x1b88] sm:$0xff] %vm99_vm0, %v1818_v0 }
 0x1cc   : > { %982 = vst.msk [vmem:[%s1820_s19 + $0x1b90] sm:$0xff] %vm99_vm0, %v1818_v0  ;;  %983 = vst.msk [vmem:[%s1820_s19 + $0x1b98] sm:$0xff] %vm99_vm0, %v1818_v0 }
 0x1cd   : > { %984 = vst.msk [vmem:[%s1820_s19 + $0x1ba0] sm:$0xff] %vm99_vm0, %v1818_v0  ;;  %985 = vst.msk [vmem:[%s1820_s19 + $0x1ba8] sm:$0xff] %vm99_vm0, %v1818_v0 }
 0x1ce   : > { %986 = vst.msk [vmem:[%s1820_s19 + $0x1bb0] sm:$0xff] %vm99_vm0, %v1818_v0  ;;  %987 = vst.msk [vmem:[%s1820_s19 + $0x1bb8] sm:$0xff] %vm99_vm0, %v1818_v0 }
 0x1cf   : > { %988 = vst.msk [vmem:[%s1820_s19 + $0x1bc0] sm:$0xff] %vm99_vm0, %v1818_v0  ;;  %989 = vst.msk [vmem:[%s1820_s19 + $0x1bc8] sm:$0xff] %vm99_vm0, %v1818_v0 }
 0x1d0   : > { %990 = vst.msk [vmem:[%s1820_s19 + $0x1bd0] sm:$0xff] %vm99_vm0, %v1818_v0  ;;  %991 = vst.msk [vmem:[%s1820_s19 + $0x1bd8] sm:$0xff] %vm99_vm0, %v1818_v0 }
 0x1d1   : > { %992 = vst.msk [vmem:[%s1820_s19 + $0x1be0] sm:$0xff] %vm99_vm0, %v1818_v0  ;;  %993 = vst.msk [vmem:[%s1820_s19 + $0x1be8] sm:$0xff] %vm99_vm0, %v1818_v0 }
 0x1d2   : > { %994 = vst.msk [vmem:[%s1820_s19 + $0x1bf0] sm:$0xff] %vm99_vm0, %v1818_v0  ;;  %995 = vst.msk [vmem:[%s1820_s19 + $0x1bf8] sm:$0xff] %vm99_vm0, %v1818_v0 }
 0x1d3   : > { %996 = vst.msk [vmem:[%s1820_s19 + $0x1c00] sm:$0xff] %vm99_vm0, %v1818_v0  ;;  %997 = vst.msk [vmem:[%s1820_s19 + $0x1c08] sm:$0xff] %vm99_vm0, %v1818_v0 }
 0x1d4   : > { %998 = vst.msk [vmem:[%s1820_s19 + $0x1c10] sm:$0xff] %vm99_vm0, %v1818_v0  ;;  %999 = vst.msk [vmem:[%s1820_s19 + $0x1c18] sm:$0xff] %vm99_vm0, %v1818_v0 }
 0x1d5   : > { %1000 = vst.msk [vmem:[%s1820_s19 + $0x1c20] sm:$0xff] %vm99_vm0, %v1818_v0  ;;  %1001 = vst.msk [vmem:[%s1820_s19 + $0x1c28] sm:$0xff] %vm99_vm0, %v1818_v0 }
 0x1d6   : > { %1002 = vst.msk [vmem:[%s1820_s19 + $0x1c30] sm:$0xff] %vm99_vm0, %v1818_v0  ;;  %1003 = vst.msk [vmem:[%s1820_s19 + $0x1c38] sm:$0xff] %vm99_vm0, %v1818_v0 }
 0x1d7   : > { %1004 = vst.msk [vmem:[%s1820_s19 + $0x1c40] sm:$0xff] %vm99_vm0, %v1818_v0  ;;  %1005 = vst.msk [vmem:[%s1820_s19 + $0x1c48] sm:$0xff] %vm99_vm0, %v1818_v0 }
 0x1d8   : > { %1006 = vst.msk [vmem:[%s1820_s19 + $0x1c50] sm:$0xff] %vm99_vm0, %v1818_v0  ;;  %1007 = vst.msk [vmem:[%s1820_s19 + $0x1c58] sm:$0xff] %vm99_vm0, %v1818_v0 }
 0x1d9   : > { %1008 = vst.msk [vmem:[%s1820_s19 + $0x1c60] sm:$0xff] %vm99_vm0, %v1818_v0  ;;  %1009 = vst.msk [vmem:[%s1820_s19 + $0x1c68] sm:$0xff] %vm99_vm0, %v1818_v0 }
 0x1da   : > { %1010 = vst.msk [vmem:[%s1820_s19 + $0x1c70] sm:$0xff] %vm99_vm0, %v1818_v0  ;;  %1011 = vst.msk [vmem:[%s1820_s19 + $0x1c78] sm:$0xff] %vm99_vm0, %v1818_v0 }
 0x1db   : > { %1012 = vst.msk [vmem:[%s1820_s19 + $0x1c80] sm:$0xff] %vm99_vm0, %v1818_v0  ;;  %1013 = vst.msk [vmem:[%s1820_s19 + $0x1c88] sm:$0xff] %vm99_vm0, %v1818_v0 }
 0x1dc   : > { %1014 = vst.msk [vmem:[%s1820_s19 + $0x1c90] sm:$0xff] %vm99_vm0, %v1818_v0  ;;  %1015 = vst.msk [vmem:[%s1820_s19 + $0x1c98] sm:$0xff] %vm99_vm0, %v1818_v0 }
 0x1dd   : > { %1016 = vst.msk [vmem:[%s1820_s19 + $0x1ca0] sm:$0xff] %vm99_vm0, %v1818_v0  ;;  %1017 = vst.msk [vmem:[%s1820_s19 + $0x1ca8] sm:$0xff] %vm99_vm0, %v1818_v0 }
 0x1de   : > { %1018 = vst.msk [vmem:[%s1820_s19 + $0x1cb0] sm:$0xff] %vm99_vm0, %v1818_v0  ;;  %1019 = vst.msk [vmem:[%s1820_s19 + $0x1cb8] sm:$0xff] %vm99_vm0, %v1818_v0 }
 0x1df   : > { %1020 = vst.msk [vmem:[%s1820_s19 + $0x1cc0] sm:$0xff] %vm99_vm0, %v1818_v0  ;;  %1021 = vst.msk [vmem:[%s1820_s19 + $0x1cc8] sm:$0xff] %vm99_vm0, %v1818_v0 }
 0x1e0   : > { %1022 = vst.msk [vmem:[%s1820_s19 + $0x1cd0] sm:$0xff] %vm99_vm0, %v1818_v0  ;;  %1023 = vst.msk [vmem:[%s1820_s19 + $0x1cd8] sm:$0xff] %vm99_vm0, %v1818_v0 }
 0x1e1   : > { %1024 = vst.msk [vmem:[%s1820_s19 + $0x1ce0] sm:$0xff] %vm99_vm0, %v1818_v0  ;;  %1025 = vst.msk [vmem:[%s1820_s19 + $0x1ce8] sm:$0xff] %vm99_vm0, %v1818_v0 }
 0x1e2   : > { %1026 = vst.msk [vmem:[%s1820_s19 + $0x1cf0] sm:$0xff] %vm99_vm0, %v1818_v0  ;;  %1027 = vst.msk [vmem:[%s1820_s19 + $0x1cf8] sm:$0xff] %vm99_vm0, %v1818_v0 }
 0x1e3   : > { %1028 = vst.msk [vmem:[%s1820_s19 + $0x1d00] sm:$0xff] %vm99_vm0, %v1818_v0  ;;  %1029 = vst.msk [vmem:[%s1820_s19 + $0x1d08] sm:$0xff] %vm99_vm0, %v1818_v0 }
 0x1e4   : > { %1030 = vst.msk [vmem:[%s1820_s19 + $0x1d10] sm:$0xff] %vm99_vm0, %v1818_v0  ;;  %1031 = vst.msk [vmem:[%s1820_s19 + $0x1d18] sm:$0xff] %vm99_vm0, %v1818_v0 }
 0x1e5   : > { %1032 = vst.msk [vmem:[%s1820_s19 + $0x1d20] sm:$0xff] %vm99_vm0, %v1818_v0  ;;  %1033 = vst.msk [vmem:[%s1820_s19 + $0x1d28] sm:$0xff] %vm99_vm0, %v1818_v0 }
 0x1e6   : > { %1034 = vst.msk [vmem:[%s1820_s19 + $0x1d30] sm:$0xff] %vm99_vm0, %v1818_v0  ;;  %1035 = vst.msk [vmem:[%s1820_s19 + $0x1d38] sm:$0xff] %vm99_vm0, %v1818_v0 }
 0x1e7   : > { %1036 = vst.msk [vmem:[%s1820_s19 + $0x1d40] sm:$0xff] %vm99_vm0, %v1818_v0  ;;  %1037 = vst.msk [vmem:[%s1820_s19 + $0x1d48] sm:$0xff] %vm99_vm0, %v1818_v0 }
 0x1e8   : > { %1038 = vst.msk [vmem:[%s1820_s19 + $0x1d50] sm:$0xff] %vm99_vm0, %v1818_v0  ;;  %1039 = vst.msk [vmem:[%s1820_s19 + $0x1d58] sm:$0xff] %vm99_vm0, %v1818_v0 }
 0x1e9   : > { %1040 = vst.msk [vmem:[%s1820_s19 + $0x1d60] sm:$0xff] %vm99_vm0, %v1818_v0  ;;  %1041 = vst.msk [vmem:[%s1820_s19 + $0x1d68] sm:$0xff] %vm99_vm0, %v1818_v0 }
 0x1ea   : > { %1042 = vst.msk [vmem:[%s1820_s19 + $0x1d70] sm:$0xff] %vm99_vm0, %v1818_v0  ;;  %1043 = vst.msk [vmem:[%s1820_s19 + $0x1d78] sm:$0xff] %vm99_vm0, %v1818_v0 }
 0x1eb   : > { %1044 = vst.msk [vmem:[%s1820_s19 + $0x1d80] sm:$0xff] %vm99_vm0, %v1818_v0  ;;  %1045 = vst.msk [vmem:[%s1820_s19 + $0x1d88] sm:$0xff] %vm99_vm0, %v1818_v0 }
 0x1ec   : > { %1046 = vst.msk [vmem:[%s1820_s19 + $0x1d90] sm:$0xff] %vm99_vm0, %v1818_v0  ;;  %1047 = vst.msk [vmem:[%s1820_s19 + $0x1d98] sm:$0xff] %vm99_vm0, %v1818_v0 }
 0x1ed   : > { %1048 = vst.msk [vmem:[%s1820_s19 + $0x1da0] sm:$0xff] %vm99_vm0, %v1818_v0  ;;  %1049 = vst.msk [vmem:[%s1820_s19 + $0x1da8] sm:$0xff] %vm99_vm0, %v1818_v0 }
 0x1ee   : > { %1050 = vst.msk [vmem:[%s1820_s19 + $0x1db0] sm:$0xff] %vm99_vm0, %v1818_v0  ;;  %1051 = vst.msk [vmem:[%s1820_s19 + $0x1db8] sm:$0xff] %vm99_vm0, %v1818_v0 }
 0x1ef   : > { %1052 = vst.msk [vmem:[%s1820_s19 + $0x1dc0] sm:$0xff] %vm99_vm0, %v1818_v0  ;;  %1053 = vst.msk [vmem:[%s1820_s19 + $0x1dc8] sm:$0xff] %vm99_vm0, %v1818_v0 }
 0x1f0   : > { %1054 = vst.msk [vmem:[%s1820_s19 + $0x1dd0] sm:$0xff] %vm99_vm0, %v1818_v0  ;;  %1055 = vst.msk [vmem:[%s1820_s19 + $0x1dd8] sm:$0xff] %vm99_vm0, %v1818_v0 }
 0x1f1   : > { %1056 = vst.msk [vmem:[%s1820_s19 + $0x1de0] sm:$0xff] %vm99_vm0, %v1818_v0  ;;  %1057 = vst.msk [vmem:[%s1820_s19 + $0x1de8] sm:$0xff] %vm99_vm0, %v1818_v0 }
 0x1f2   : > { %1058 = vst.msk [vmem:[%s1820_s19 + $0x1df0] sm:$0xff] %vm99_vm0, %v1818_v0  ;;  %1059 = vst.msk [vmem:[%s1820_s19 + $0x1df8] sm:$0xff] %vm99_vm0, %v1818_v0 }
 0x1f3   : > { %1060 = vst.msk [vmem:[%s1820_s19 + $0x1e00] sm:$0xff] %vm99_vm0, %v1818_v0  ;;  %1061 = vst.msk [vmem:[%s1820_s19 + $0x1e08] sm:$0xff] %vm99_vm0, %v1818_v0 }
 0x1f4   : > { %1062 = vst.msk [vmem:[%s1820_s19 + $0x1e10] sm:$0xff] %vm99_vm0, %v1818_v0  ;;  %1063 = vst.msk [vmem:[%s1820_s19 + $0x1e18] sm:$0xff] %vm99_vm0, %v1818_v0 }
 0x1f5   : > { %1064 = vst.msk [vmem:[%s1820_s19 + $0x1e20] sm:$0xff] %vm99_vm0, %v1818_v0  ;;  %1065 = vst.msk [vmem:[%s1820_s19 + $0x1e28] sm:$0xff] %vm99_vm0, %v1818_v0 }
 0x1f6   : > { %1066 = vst.msk [vmem:[%s1820_s19 + $0x1e30] sm:$0xff] %vm99_vm0, %v1818_v0  ;;  %1067 = vst.msk [vmem:[%s1820_s19 + $0x1e38] sm:$0xff] %vm99_vm0, %v1818_v0 }
 0x1f7   : > { %1068 = vst.msk [vmem:[%s1820_s19 + $0x1e40] sm:$0xff] %vm99_vm0, %v1818_v0  ;;  %1069 = vst.msk [vmem:[%s1820_s19 + $0x1e48] sm:$0xff] %vm99_vm0, %v1818_v0 }
 0x1f8   : > { %1070 = vst.msk [vmem:[%s1820_s19 + $0x1e50] sm:$0xff] %vm99_vm0, %v1818_v0  ;;  %1071 = vst.msk [vmem:[%s1820_s19 + $0x1e58] sm:$0xff] %vm99_vm0, %v1818_v0 }
 0x1f9   : > { %1072 = vst.msk [vmem:[%s1820_s19 + $0x1e60] sm:$0xff] %vm99_vm0, %v1818_v0  ;;  %1073 = vst.msk [vmem:[%s1820_s19 + $0x1e68] sm:$0xff] %vm99_vm0, %v1818_v0 }
 0x1fa   : > { %1074 = vst.msk [vmem:[%s1820_s19 + $0x1e70] sm:$0xff] %vm99_vm0, %v1818_v0  ;;  %1075 = vst.msk [vmem:[%s1820_s19 + $0x1e78] sm:$0xff] %vm99_vm0, %v1818_v0 }
 0x1fb   : > { %1076 = vst.msk [vmem:[%s1820_s19 + $0x1e80] sm:$0xff] %vm99_vm0, %v1818_v0  ;;  %1077 = vst.msk [vmem:[%s1820_s19 + $0x1e88] sm:$0xff] %vm99_vm0, %v1818_v0 }
 0x1fc   : > { %1078 = vst.msk [vmem:[%s1820_s19 + $0x1e90] sm:$0xff] %vm99_vm0, %v1818_v0  ;;  %1079 = vst.msk [vmem:[%s1820_s19 + $0x1e98] sm:$0xff] %vm99_vm0, %v1818_v0 }
 0x1fd   : > { %1080 = vst.msk [vmem:[%s1820_s19 + $0x1ea0] sm:$0xff] %vm99_vm0, %v1818_v0  ;;  %1081 = vst.msk [vmem:[%s1820_s19 + $0x1ea8] sm:$0xff] %vm99_vm0, %v1818_v0 }
 0x1fe   : > { %1082 = vst.msk [vmem:[%s1820_s19 + $0x1eb0] sm:$0xff] %vm99_vm0, %v1818_v0  ;;  %1083 = vst.msk [vmem:[%s1820_s19 + $0x1eb8] sm:$0xff] %vm99_vm0, %v1818_v0 }
 0x1ff   : > { %1084 = vst.msk [vmem:[%s1820_s19 + $0x1ec0] sm:$0xff] %vm99_vm0, %v1818_v0  ;;  %1085 = vst.msk [vmem:[%s1820_s19 + $0x1ec8] sm:$0xff] %vm99_vm0, %v1818_v0 }
 0x200   : > { %1086 = vst.msk [vmem:[%s1820_s19 + $0x1ed0] sm:$0xff] %vm99_vm0, %v1818_v0  ;;  %1087 = vst.msk [vmem:[%s1820_s19 + $0x1ed8] sm:$0xff] %vm99_vm0, %v1818_v0 }
 0x201   : > { %1088 = vst.msk [vmem:[%s1820_s19 + $0x1ee0] sm:$0xff] %vm99_vm0, %v1818_v0  ;;  %1089 = vst.msk [vmem:[%s1820_s19 + $0x1ee8] sm:$0xff] %vm99_vm0, %v1818_v0 }
 0x202   : > { %1090 = vst.msk [vmem:[%s1820_s19 + $0x1ef0] sm:$0xff] %vm99_vm0, %v1818_v0  ;;  %1091 = vst.msk [vmem:[%s1820_s19 + $0x1ef8] sm:$0xff] %vm99_vm0, %v1818_v0 }
 0x203   : > { %1092 = vst.msk [vmem:[%s1820_s19 + $0x1f00] sm:$0xff] %vm99_vm0, %v1818_v0  ;;  %1093 = vst.msk [vmem:[%s1820_s19 + $0x1f08] sm:$0xff] %vm99_vm0, %v1818_v0 }
 0x204   : > { %1094 = vst.msk [vmem:[%s1820_s19 + $0x1f10] sm:$0xff] %vm99_vm0, %v1818_v0  ;;  %1095 = vst.msk [vmem:[%s1820_s19 + $0x1f18] sm:$0xff] %vm99_vm0, %v1818_v0 }
 0x205   : > { %1096 = vst.msk [vmem:[%s1820_s19 + $0x1f20] sm:$0xff] %vm99_vm0, %v1818_v0  ;;  %1097 = vst.msk [vmem:[%s1820_s19 + $0x1f28] sm:$0xff] %vm99_vm0, %v1818_v0 }
 0x206   : > { %1098 = vst.msk [vmem:[%s1820_s19 + $0x1f30] sm:$0xff] %vm99_vm0, %v1818_v0  ;;  %1099 = vst.msk [vmem:[%s1820_s19 + $0x1f38] sm:$0xff] %vm99_vm0, %v1818_v0 }
 0x207   : > { %1100 = vst.msk [vmem:[%s1820_s19 + $0x1f40] sm:$0xff] %vm99_vm0, %v1818_v0  ;;  %1101 = vst.msk [vmem:[%s1820_s19 + $0x1f48] sm:$0xff] %vm99_vm0, %v1818_v0 }
 0x208   : > { %1102 = vst.msk [vmem:[%s1820_s19 + $0x1f50] sm:$0xff] %vm99_vm0, %v1818_v0  ;;  %1103 = vst.msk [vmem:[%s1820_s19 + $0x1f58] sm:$0xff] %vm99_vm0, %v1818_v0 }
 0x209   : > { %1104 = vst.msk [vmem:[%s1820_s19 + $0x1f60] sm:$0xff] %vm99_vm0, %v1818_v0  ;;  %1105 = vst.msk [vmem:[%s1820_s19 + $0x1f68] sm:$0xff] %vm99_vm0, %v1818_v0 }
 0x20a   : > { %1106 = vst.msk [vmem:[%s1820_s19 + $0x1f70] sm:$0xff] %vm99_vm0, %v1818_v0  ;;  %1107 = vst.msk [vmem:[%s1820_s19 + $0x1f78] sm:$0xff] %vm99_vm0, %v1818_v0 }
 0x20b   : > { %1108 = vst.msk [vmem:[%s1820_s19 + $0x1f80] sm:$0xff] %vm99_vm0, %v1818_v0  ;;  %1109 = vst.msk [vmem:[%s1820_s19 + $0x1f88] sm:$0xff] %vm99_vm0, %v1818_v0 }
 0x20c   : > { %1110 = vst.msk [vmem:[%s1820_s19 + $0x1f90] sm:$0xff] %vm99_vm0, %v1818_v0  ;;  %1111 = vst.msk [vmem:[%s1820_s19 + $0x1f98] sm:$0xff] %vm99_vm0, %v1818_v0  ;;  %1130 = sbr.rel (!%p1814_p4) target bundleno = 603 (0x25b), region = 28 }
 0x20d   : > { %1112 = vst.msk [vmem:[%s1820_s19 + $0x1fa0] sm:$0xff] %vm99_vm0, %v1818_v0  ;;  %1113 = vst.msk [vmem:[%s1820_s19 + $0x1fa8] sm:$0xff] %vm99_vm0, %v1818_v0 }
 0x20e   : > { %1114 = vst.msk [vmem:[%s1820_s19 + $0x1fb0] sm:$0xff] %vm99_vm0, %v1818_v0  ;;  %1115 = vst.msk [vmem:[%s1820_s19 + $0x1fb8] sm:$0xff] %vm99_vm0, %v1818_v0 }
 0x20f   : > { %1116 = vst.msk [vmem:[%s1820_s19 + $0x1fc0] sm:$0xff] %vm99_vm0, %v1818_v0  ;;  %1117 = vst.msk [vmem:[%s1820_s19 + $0x1fc8] sm:$0xff] %vm99_vm0, %v1818_v0 }
 0x210   : > { %1118 = vst.msk [vmem:[%s1820_s19 + $0x1fd0] sm:$0xff] %vm99_vm0, %v1818_v0  ;;  %1119 = vst.msk [vmem:[%s1820_s19 + $0x1fd8] sm:$0xff] %vm99_vm0, %v1818_v0 }
 0x211   : > { %1120 = vst.msk [vmem:[%s1820_s19 + $0x1fe0] sm:$0xff] %vm99_vm0, %v1818_v0  ;;  %1121 = vst.msk [vmem:[%s1820_s19 + $0x1fe8] sm:$0xff] %vm99_vm0, %v1818_v0 }
 0x212   : > { %1122 = vst.msk [vmem:[%s1820_s19 + $0x1ff0] sm:$0xff] %vm99_vm0, %v1818_v0  ;;  %1123 = vst.msk [vmem:[%s1820_s19 + $0x1ff8] sm:$0xff] %vm99_vm0, %v1818_v0 }
 0x213   : > { %s5112_s22 = smov (!%p1133_p7, %s1132_s22), 1024 }
 0x214   : > { %s1585_s26 = sshll.u32 %s5112_s22, 7 }
 0x215   : > { %p1588_p8 = scmp.eq.s32.totalorder %s1585_s26, 0 }
 0x216   : > { %s4907_s27 = sshrl.u32 (!%p1588_p8), %s5112_s22, 6 }
 0x217   : > { %1141 = sbr.rel (%p1588_p8) target bundleno = 603 (0x25b), region = 32  ;;  %p1589_p9 = scmp.le.s32.totalorder (!%p1588_p8), %s4907_s27, 0 }
 0x21e   : > { %1541 = sbr.rel (%p1589_p9) target bundleno = 582 (0x246), region = 105  ;;  %s5103_s28 = smov (!%p1589_p9), %s4901_s25 }
 0x21f   : > { %s5104_s29 = smov (!%p1589_p9), %s1820_s19  ;;  %s4916_s30 = smov (!%p1589_p9), 0  }
 0x220   : > { %s4918_s2 = smov (!%p1589_p9), 0  }
 0x225 LB: >> { %v1329_v1 = vld [vmem:[%s1753_s29] sm:$0xff]  ;;  %v1331_v2 = vld [vmem:[%s1753_s29 + $0x8] sm:$0xff]  ;;  %v1333_v3 = vld [vmem:[%s1753_s29 + $0x10] sm:$0xff]  ;;  %s1457_s3 = sadd.s32 1, %s1757_s30  ;;  %s1323_s2 = sadd.s32 1, %s1761_s2   ;;  %s1761_s2 = sphi %s4918_s2, %s1323_s2   ;;  %s1757_s30 = sphi %s4916_s30, %s5107_s30   ;;  %s1753_s29 = sphi %s5104_s29, %s5106_s29   ;;  %s1749_s28 = sphi %s5103_s28, %s5105_s28  }
 0x226   : >> { %1330 = vst [vmem:[%s1749_s28] sm:$0xff] %v1329_v1  ;;  %1332 = vst [vmem:[%s1749_s28 + $0x8] sm:$0xff] %v1331_v2  ;;  %v1335_v4 = vld [vmem:[%s1753_s29 + $0x18] sm:$0xff]  ;;  %v1337_v5 = vld [vmem:[%s1753_s29 + $0x20] sm:$0xff]  ;;  %p1458_p10 = scmp.ge.s32.totalorder %s1457_s3, %s4907_s27  ;;  %p1322_p11 = scmp.ge.s32.totalorder %s1323_s2, %s4907_s27 }
 0x227   : >> { %1334 = vst [vmem:[%s1749_s28 + $0x10] sm:$0xff] %v1333_v3  ;;  %v1339_v6 = vld [vmem:[%s1753_s29 + $0x28] sm:$0xff]  ;;  %1336 = vst [vmem:[%s1749_s28 + $0x18] sm:$0xff] %v1335_v4  ;;  %v1341_v7 = vld [vmem:[%s1753_s29 + $0x30] sm:$0xff] }
 0x228   : >> { %1338 = vst [vmem:[%s1749_s28 + $0x20] sm:$0xff] %v1337_v5  ;;  %1340 = vst [vmem:[%s1749_s28 + $0x28] sm:$0xff] %v1339_v6  ;;  %v1343_v8 = vld [vmem:[%s1753_s29 + $0x38] sm:$0xff]  ;;  %v1345_v9 = vld [vmem:[%s1753_s29 + $0x40] sm:$0xff]  ;;  %s5114_s3 = smov (%p1458_p10, %s1457_s3), 0 }
 0x229   : >> { %1342 = vst [vmem:[%s1749_s28 + $0x30] sm:$0xff] %v1341_v7  ;;  %1344 = vst [vmem:[%s1749_s28 + $0x38] sm:$0xff] %v1343_v8  ;;  %v1347_v10 = vld [vmem:[%s1753_s29 + $0x48] sm:$0xff]  ;;  %v1349_v11 = vld [vmem:[%s1753_s29 + $0x50] sm:$0xff]  ;;  %s1590_s4 = sshll.u32 %s5114_s3, 9  ;;  %s5107_s30 = smov %s5114_s3 }
 0x22a   : >> { %1346 = vst [vmem:[%s1749_s28 + $0x40] sm:$0xff] %v1345_v9  ;;  %v1351_v12 = vld [vmem:[%s1753_s29 + $0x58] sm:$0xff]  ;;  %1348 = vst [vmem:[%s1749_s28 + $0x48] sm:$0xff] %v1347_v10  ;;  %v1353_v13 = vld [vmem:[%s1753_s29 + $0x60] sm:$0xff]  ;;  %s4974_s5 = scalar_lea.vmem %s1820_s19, %s1590_s4 [#allocation3]   ;;  %s4977_s6 = scalar_lea.vmem %s4901_s25, %s1590_s4  }
 0x22b   : >> { %1350 = vst [vmem:[%s1749_s28 + $0x50] sm:$0xff] %v1349_v11  ;;  %1352 = vst [vmem:[%s1749_s28 + $0x58] sm:$0xff] %v1351_v12  ;;  %v1355_v14 = vld [vmem:[%s1753_s29 + $0x68] sm:$0xff]  ;;  %v1357_v15 = vld [vmem:[%s1753_s29 + $0x70] sm:$0xff] }
 0x22c   : >> { %1354 = vst [vmem:[%s1749_s28 + $0x60] sm:$0xff] %v1353_v13  ;;  %1356 = vst [vmem:[%s1749_s28 + $0x68] sm:$0xff] %v1355_v14  ;;  %v1359_v16 = vld [vmem:[%s1753_s29 + $0x78] sm:$0xff]  ;;  %v1361_v17 = vld [vmem:[%s1753_s29 + $0x80] sm:$0xff] }
 0x22d   : >> { %1358 = vst [vmem:[%s1749_s28 + $0x70] sm:$0xff] %v1357_v15  ;;  %v1363_v18 = vld [vmem:[%s1753_s29 + $0x88] sm:$0xff]  ;;  %1360 = vst [vmem:[%s1749_s28 + $0x78] sm:$0xff] %v1359_v16  ;;  %v1365_v19 = vld [vmem:[%s1753_s29 + $0x90] sm:$0xff] }
 0x22e   : >> { %1362 = vst [vmem:[%s1749_s28 + $0x80] sm:$0xff] %v1361_v17  ;;  %1364 = vst [vmem:[%s1749_s28 + $0x88] sm:$0xff] %v1363_v18  ;;  %v1367_v20 = vld [vmem:[%s1753_s29 + $0x98] sm:$0xff]  ;;  %v1369_v21 = vld [vmem:[%s1753_s29 + $0xa0] sm:$0xff] }
 0x22f   : >> { %1366 = vst [vmem:[%s1749_s28 + $0x90] sm:$0xff] %v1365_v19  ;;  %1368 = vst [vmem:[%s1749_s28 + $0x98] sm:$0xff] %v1367_v20  ;;  %v1371_v22 = vld [vmem:[%s1753_s29 + $0xa8] sm:$0xff]  ;;  %v1373_v23 = vld [vmem:[%s1753_s29 + $0xb0] sm:$0xff] }
 0x230   : >> { %1370 = vst [vmem:[%s1749_s28 + $0xa0] sm:$0xff] %v1369_v21  ;;  %v1375_v24 = vld [vmem:[%s1753_s29 + $0xb8] sm:$0xff]  ;;  %1372 = vst [vmem:[%s1749_s28 + $0xa8] sm:$0xff] %v1371_v22  ;;  %v1377_v25 = vld [vmem:[%s1753_s29 + $0xc0] sm:$0xff] }
 0x231   : >> { %1374 = vst [vmem:[%s1749_s28 + $0xb0] sm:$0xff] %v1373_v23  ;;  %1376 = vst [vmem:[%s1749_s28 + $0xb8] sm:$0xff] %v1375_v24  ;;  %v1379_v26 = vld [vmem:[%s1753_s29 + $0xc8] sm:$0xff]  ;;  %v1381_v27 = vld [vmem:[%s1753_s29 + $0xd0] sm:$0xff] }
 0x232   : >> { %1378 = vst [vmem:[%s1749_s28 + $0xc0] sm:$0xff] %v1377_v25  ;;  %1380 = vst [vmem:[%s1749_s28 + $0xc8] sm:$0xff] %v1379_v26  ;;  %v1383_v28 = vld [vmem:[%s1753_s29 + $0xd8] sm:$0xff]  ;;  %v1385_v29 = vld [vmem:[%s1753_s29 + $0xe0] sm:$0xff] }
 0x233   : >> { %1382 = vst [vmem:[%s1749_s28 + $0xd0] sm:$0xff] %v1381_v27  ;;  %v1387_v30 = vld [vmem:[%s1753_s29 + $0xe8] sm:$0xff]  ;;  %1384 = vst [vmem:[%s1749_s28 + $0xd8] sm:$0xff] %v1383_v28  ;;  %v1389_v31 = vld [vmem:[%s1753_s29 + $0xf0] sm:$0xff] }
 0x234   : >> { %1386 = vst [vmem:[%s1749_s28 + $0xe0] sm:$0xff] %v1385_v29  ;;  %1388 = vst [vmem:[%s1749_s28 + $0xe8] sm:$0xff] %v1387_v30  ;;  %v1391_v32 = vld [vmem:[%s1753_s29 + $0xf8] sm:$0xff]  ;;  %v1393_v33 = vld [vmem:[%s1753_s29 + $0x100] sm:$0xff] }
 0x235   : >> { %1390 = vst [vmem:[%s1749_s28 + $0xf0] sm:$0xff] %v1389_v31  ;;  %1392 = vst [vmem:[%s1749_s28 + $0xf8] sm:$0xff] %v1391_v32  ;;  %v1395_v34 = vld [vmem:[%s1753_s29 + $0x108] sm:$0xff]  ;;  %v1397_v35 = vld [vmem:[%s1753_s29 + $0x110] sm:$0xff] }
 0x236   : >> { %1394 = vst [vmem:[%s1749_s28 + $0x100] sm:$0xff] %v1393_v33  ;;  %v1399_v36 = vld [vmem:[%s1753_s29 + $0x118] sm:$0xff]  ;;  %1396 = vst [vmem:[%s1749_s28 + $0x108] sm:$0xff] %v1395_v34  ;;  %v1401_v37 = vld [vmem:[%s1753_s29 + $0x120] sm:$0xff] }
 0x237   : >> { %1398 = vst [vmem:[%s1749_s28 + $0x110] sm:$0xff] %v1397_v35  ;;  %1400 = vst [vmem:[%s1749_s28 + $0x118] sm:$0xff] %v1399_v36  ;;  %v1403_v38 = vld [vmem:[%s1753_s29 + $0x128] sm:$0xff]  ;;  %v1405_v39 = vld [vmem:[%s1753_s29 + $0x130] sm:$0xff] }
 0x238   : >> { %1402 = vst [vmem:[%s1749_s28 + $0x120] sm:$0xff] %v1401_v37  ;;  %1404 = vst [vmem:[%s1749_s28 + $0x128] sm:$0xff] %v1403_v38  ;;  %v1407_v40 = vld [vmem:[%s1753_s29 + $0x138] sm:$0xff]  ;;  %v1409_v41 = vld [vmem:[%s1753_s29 + $0x140] sm:$0xff] }
 0x239   : >> { %1406 = vst [vmem:[%s1749_s28 + $0x130] sm:$0xff] %v1405_v39  ;;  %v1411_v42 = vld [vmem:[%s1753_s29 + $0x148] sm:$0xff]  ;;  %1408 = vst [vmem:[%s1749_s28 + $0x138] sm:$0xff] %v1407_v40  ;;  %v1413_v43 = vld [vmem:[%s1753_s29 + $0x150] sm:$0xff] }
 0x23a   : >> { %1410 = vst [vmem:[%s1749_s28 + $0x140] sm:$0xff] %v1409_v41  ;;  %1412 = vst [vmem:[%s1749_s28 + $0x148] sm:$0xff] %v1411_v42  ;;  %v1415_v44 = vld [vmem:[%s1753_s29 + $0x158] sm:$0xff]  ;;  %v1417_v45 = vld [vmem:[%s1753_s29 + $0x160] sm:$0xff] }
 0x23b   : >> { %1414 = vst [vmem:[%s1749_s28 + $0x150] sm:$0xff] %v1413_v43  ;;  %1416 = vst [vmem:[%s1749_s28 + $0x158] sm:$0xff] %v1415_v44  ;;  %v1419_v46 = vld [vmem:[%s1753_s29 + $0x168] sm:$0xff]  ;;  %v1421_v47 = vld [vmem:[%s1753_s29 + $0x170] sm:$0xff] }
 0x23c   : >> { %1418 = vst [vmem:[%s1749_s28 + $0x160] sm:$0xff] %v1417_v45  ;;  %v1423_v48 = vld [vmem:[%s1753_s29 + $0x178] sm:$0xff]  ;;  %1420 = vst [vmem:[%s1749_s28 + $0x168] sm:$0xff] %v1419_v46  ;;  %v1425_v49 = vld [vmem:[%s1753_s29 + $0x180] sm:$0xff] }
 0x23d   : >> { %1422 = vst [vmem:[%s1749_s28 + $0x170] sm:$0xff] %v1421_v47  ;;  %1424 = vst [vmem:[%s1749_s28 + $0x178] sm:$0xff] %v1423_v48  ;;  %v1427_v50 = vld [vmem:[%s1753_s29 + $0x188] sm:$0xff]  ;;  %v1429_v51 = vld [vmem:[%s1753_s29 + $0x190] sm:$0xff] }
 0x23e   : >> { %1426 = vst [vmem:[%s1749_s28 + $0x180] sm:$0xff] %v1425_v49  ;;  %1428 = vst [vmem:[%s1749_s28 + $0x188] sm:$0xff] %v1427_v50  ;;  %v1431_v52 = vld [vmem:[%s1753_s29 + $0x198] sm:$0xff]  ;;  %v1433_v53 = vld [vmem:[%s1753_s29 + $0x1a0] sm:$0xff] }
 0x23f   : >> { %1430 = vst [vmem:[%s1749_s28 + $0x190] sm:$0xff] %v1429_v51  ;;  %v1435_v54 = vld [vmem:[%s1753_s29 + $0x1a8] sm:$0xff]  ;;  %1432 = vst [vmem:[%s1749_s28 + $0x198] sm:$0xff] %v1431_v52  ;;  %v1437_v55 = vld [vmem:[%s1753_s29 + $0x1b0] sm:$0xff]  ;;  %1325 = sbr.rel (!%p1322_p11) target bundleno = 549 (0x225), region = 111 }
 0x240   : >> { %1434 = vst [vmem:[%s1749_s28 + $0x1a0] sm:$0xff] %v1433_v53  ;;  %1436 = vst [vmem:[%s1749_s28 + $0x1a8] sm:$0xff] %v1435_v54  ;;  %v1439_v56 = vld [vmem:[%s1753_s29 + $0x1b8] sm:$0xff]  ;;  %v1441_v57 = vld [vmem:[%s1753_s29 + $0x1c0] sm:$0xff] }
 0x241   : >> { %1438 = vst [vmem:[%s1749_s28 + $0x1b0] sm:$0xff] %v1437_v55  ;;  %1440 = vst [vmem:[%s1749_s28 + $0x1b8] sm:$0xff] %v1439_v56  ;;  %v1443_v58 = vld [vmem:[%s1753_s29 + $0x1c8] sm:$0xff]  ;;  %v1445_v59 = vld [vmem:[%s1753_s29 + $0x1d0] sm:$0xff] }
 0x242   : >> { %1442 = vst [vmem:[%s1749_s28 + $0x1c0] sm:$0xff] %v1441_v57  ;;  %v1447_v60 = vld [vmem:[%s1753_s29 + $0x1d8] sm:$0xff]  ;;  %1444 = vst [vmem:[%s1749_s28 + $0x1c8] sm:$0xff] %v1443_v58  ;;  %v1449_v61 = vld [vmem:[%s1753_s29 + $0x1e0] sm:$0xff] }
 0x243   : >> { %1446 = vst [vmem:[%s1749_s28 + $0x1d0] sm:$0xff] %v1445_v59  ;;  %1448 = vst [vmem:[%s1749_s28 + $0x1d8] sm:$0xff] %v1447_v60  ;;  %v1451_v62 = vld [vmem:[%s1753_s29 + $0x1e8] sm:$0xff]  ;;  %v1453_v63 = vld [vmem:[%s1753_s29 + $0x1f0] sm:$0xff] }
 0x244   : >> { %1450 = vst [vmem:[%s1749_s28 + $0x1e0] sm:$0xff] %v1449_v61  ;;  %1452 = vst [vmem:[%s1749_s28 + $0x1e8] sm:$0xff] %v1451_v62  ;;  %v1455_v0 = vld [vmem:[%s1753_s29 + $0x1f8] sm:$0xff]  ;;  %s5106_s29 = smov %s4974_s5 }
 0x245   : >> { %1454 = vst [vmem:[%s1749_s28 + $0x1f0] sm:$0xff] %v1453_v63  ;;  %1456 = vst [vmem:[%s1749_s28 + $0x1f8] sm:$0xff] %v1455_v0  ;;  %s5105_s28 = smov %s4977_s6 }
 0x246 PF: > { %s5082_s7 = sand.u32 63, %s5112_s22   ;;  %s1601_s8 = sshll.u32 %s4907_s27, 9 }
 0x247   : > { %s1468_s10 = scalar_lea.vmem %s1820_s19, %s1601_s8 [#allocation3]   ;;  %s1470_s11 = scalar_lea.vmem %s4901_s25, %s1601_s8  }
 0x248   : > { %p1595_p12 = scmp.le.s32.totalorder %s5082_s7, 0 }
 0x249   : > { %s1763_s12 = smov (!%p1595_p12), %s1470_s11   ;;  %s1767_s13 = smov (!%p1595_p12), %s1468_s10  }
 0x24a   : > { %1555 = sbr.rel (%p1595_p12) target bundleno = 603 (0x25b), region = 116  ;;  %s1771_s15 = smov (!%p1595_p12), 0  }
 0x24b   : > { %s1775_s16 = smov (!%p1595_p12), 0  }
 0x251 LB: >> { %v1480_v1 = vld [vmem:[%s1769_s13] sm:$0xff]  ;;  %s1482_s17 = sadd.s32 1, %s1773_s15  ;;  %s1474_s16 = sadd.s32 1, %s1777_s16   ;;  %s1777_s16 = sphi %s1775_s16, %s1474_s16   ;;  %s1773_s15 = sphi %s1771_s15, %s1772_s15   ;;  %s1769_s13 = sphi %s1767_s13, %s1487_s13   ;;  %s1765_s12 = sphi %s1763_s12, %s1488_s12  }
 0x252   : >> { %1481 = vst [vmem:[%s1765_s12] sm:$0xff] %v1480_v1  ;;  %p1483_p13 = scmp.ge.s32.totalorder %s1482_s17, %s5082_s7  ;;  %p1473_p0 = scmp.ge.s32.totalorder %s1474_s16, %s5082_s7 }
 0x254   : >> { %s5116_s17 = smov (%p1483_p13, %s1482_s17), 0  ;;  %1476 = sbr.rel (!%p1473_p0) target bundleno = 593 (0x251), region = 122 }
 0x255   : >> { %s1596_s18 = sshll.u32 %s5116_s17, 3  ;;  %s1772_s15 = smov %s5116_s17  }
 0x256   : >> { %s1487_s13 = scalar_lea.vmem %s1468_s10, %s1596_s18 [#allocation3]   ;;  %s1488_s12 = scalar_lea.vmem %s1470_s11, %s1596_s18  }
 0x25b PF: > { %p9_p1 = scmp.ge.s32.totalorder %s1805_s0, 4   ;;  %s5108_s8 = smov %s1741_s9 }
 0x25c   : > { %s5109_s9 = smov %s1812_s14  ;;  %s5110_s10 = smov %s1805_s0 }
 0x25d   :  { %11 = sbr.rel (!%p9_p1) target bundleno = 4 (0x4), region = 133 }

</bundles_post_ra>
